<compile_context>
chip_gen: v7x
topology: tpu7x:2x2x1
jax: 0.10.0
libtpu: 0.0.40
codegen_flags: <defaults>
</compile_context>

<pallas_src>
import jax
import jax.numpy as jnp
from jax.experimental import pallas as pl
from jax.experimental.pallas import tpu as pltpu


INPUT_FEATURES = 11
HIDDEN1, HIDDEN2, HIDDEN3, OUT_FEATURES = 1000, 500, 250, 4

# Lane-dense (multiple-of-128) padded dims used inside the kernel.
H1P, H2P, H3P, OUTP = 1024, 512, 256, 128
NEG_PAD_BIAS = -1e30  # padded logits -> exp() underflows to exactly 0


def mlp_kernel(x_ref, w1_ref, b1_ref, w2_ref, b2_ref,
               w3_ref, b3_ref, w4_ref, b4_ref, o_ref):
    # bf16 operands into the MXU, f32 accumulation, f32 biases.
    x = x_ref[...]

    h1 = jnp.dot(x, w1_ref[...], preferred_element_type=jnp.float32) + b1_ref[...]
    h1 = jnp.maximum(h1, 0.0).astype(jnp.bfloat16)

    h2 = jnp.dot(h1, w2_ref[...], preferred_element_type=jnp.float32) + b2_ref[...]
    h2 = jnp.maximum(h2, 0.0).astype(jnp.bfloat16)

    h3 = jnp.dot(h2, w3_ref[...], preferred_element_type=jnp.float32) + b3_ref[...]
    h3 = jnp.maximum(h3, 0.0).astype(jnp.bfloat16)

    # Output layer: w4 zero-padded, b4 padded with -1e30 -> padded lanes
    # contribute exactly 0 to the softmax numerator and denominator.
    logits = jnp.dot(h3, w4_ref[...], preferred_element_type=jnp.float32) + b4_ref[...]

    m = jnp.max(logits, axis=-1, keepdims=True)
    e = jnp.exp(logits - m)
    o_ref[...] = (e / jnp.sum(e, axis=-1, keepdims=True)).astype(o_ref.dtype)


def _pad_axis(a, target, axis, value=0.0):
    pad = target - a.shape[axis]
    if pad <= 0:
        return a
    widths = [(0, 0)] * a.ndim
    widths[axis] = (0, pad)
    return jnp.pad(a, widths, constant_values=value)


def prepare_params(params):
    """One-time cast to bf16 + zero-pad all feature dims to lane multiples."""
    (w1, b1), (w2, b2), (w3, b3), (w4, b4) = params
    bf16 = jnp.bfloat16

    w1p = _pad_axis(w1.astype(bf16), H1P, axis=1)                      # (11, 1024)
    b1p = _pad_axis(b1, H1P, axis=1)                                   # (1, 1024) f32
    w2p = _pad_axis(_pad_axis(w2.astype(bf16), H1P, 0), H2P, 1)        # (1024, 512)
    b2p = _pad_axis(b2, H2P, axis=1)                                   # (1, 512)  f32
    w3p = _pad_axis(_pad_axis(w3.astype(bf16), H2P, 0), H3P, 1)        # (512, 256)
    b3p = _pad_axis(b3, H3P, axis=1)                                   # (1, 256)  f32
    w4p = _pad_axis(_pad_axis(w4.astype(bf16), H3P, 0), OUTP, 1)       # (256, 128)
    b4p = _pad_axis(b4, OUTP, axis=1, value=NEG_PAD_BIAS)              # (1, 128)  f32

    return (w1p, b1p, w2p, b2p, w3p, b3p, w4p, b4p)


def mlp_forward(x, prepared):
    """x: (B, 11) float32, prepared = prepare_params(params). Returns (B, 4) f32."""
    B = x.shape[0]
    b_pad = (-B) % 8                      # sublane-align the batch
    x_p = jnp.pad(x, ((0, b_pad), (0, 0))) if b_pad else x
    Bp = B + b_pad
    x_p = x_p.astype(jnp.bfloat16)

    args = (x_p,) + tuple(prepared)

    flops = 2 * Bp * (INPUT_FEATURES * H1P + H1P * H2P + H2P * H3P + H3P * OUTP)
    bytes_accessed = (sum(int(a.size) * a.dtype.itemsize for a in args)
                      + Bp * OUTP * 4)

    vmem_spec = pl.BlockSpec(memory_space=pltpu.MemorySpace.VMEM)

    out = pl.pallas_call(
        mlp_kernel,
        out_shape=jax.ShapeDtypeStruct((Bp, OUTP), jnp.float32),
        in_specs=[vmem_spec] * len(args),
        out_specs=vmem_spec,
        cost_estimate=pl.CostEstimate(
            flops=flops,
            transcendentals=Bp * OUTP,
            bytes_accessed=bytes_accessed,
        ),
    )(*args)

    return out[:B, :OUT_FEATURES]


def init_linear(key, in_f, out_f):
    # Mimic PyTorch's default nn.Linear init: U(-1/sqrt(in_f), 1/sqrt(in_f)).
    kw, kb = jax.random.split(key)
    bound = 1.0 / jnp.sqrt(jnp.float32(in_f))
    w = jax.random.uniform(kw, (in_f, out_f), jnp.float32, -bound, bound)
    b = jax.random.uniform(kb, (1, out_f), jnp.float32, -bound, bound)
    return w, b


def reference_forward(x, params):
    (w1, b1), (w2, b2), (w3, b3), (w4, b4) = params
    h = jnp.maximum(x @ w1 + b1, 0.0)
    h = jnp.maximum(h @ w2 + b2, 0.0)
    h = jnp.maximum(h @ w3 + b3, 0.0)
    logits = h @ w4 + b4
    return jax.nn.softmax(logits, axis=1)


if __name__ == "__main__":
    key = jax.random.PRNGKey(0)
    k_x, k1, k2, k3, k4 = jax.random.split(key, 5)

    batch = 8
    x = jax.random.normal(k_x, (batch, INPUT_FEATURES), jnp.float32)

    params = (
        init_linear(k1, INPUT_FEATURES, HIDDEN1),
        init_linear(k2, HIDDEN1, HIDDEN2),
        init_linear(k3, HIDDEN2, HIDDEN3),
        init_linear(k4, HIDDEN3, OUT_FEATURES),
    )

    prepared = jax.tree_util.tree_map(jax.block_until_ready, prepare_params(params))

    forward = jax.jit(mlp_forward)
    out = jax.block_until_ready(forward(x, prepared))
    ref = jax.block_until_ready(reference_forward(x, params))

    assert out.shape == (batch, OUT_FEATURES)
    # bf16 weight/activation streaming loosens the tolerance vs the f32 reference.
    assert jnp.allclose(out, ref, atol=3e-2, rtol=3e-2), "mismatch vs reference"
    assert jnp.allclose(jnp.sum(out, axis=1), 1.0, atol=1e-5), "softmax rows must sum to 1"

    print("KERNEL_OK")
</pallas_src>

<mosaic_0001>
module attributes {stable_mosaic.version = 11 : i64} {
  func.func @mlp_kernel(%arg0: memref<8x11xbf16, #tpu.memory_space<vmem>>, %arg1: memref<11x1024xbf16, #tpu.memory_space<vmem>>, %arg2: memref<1x1024xf32, #tpu.memory_space<vmem>>, %arg3: memref<1024x512xbf16, #tpu.memory_space<vmem>>, %arg4: memref<1x512xf32, #tpu.memory_space<vmem>>, %arg5: memref<512x256xbf16, #tpu.memory_space<vmem>>, %arg6: memref<1x256xf32, #tpu.memory_space<vmem>>, %arg7: memref<256x128xbf16, #tpu.memory_space<vmem>>, %arg8: memref<1x128xf32, #tpu.memory_space<vmem>>, %arg9: memref<8x128xf32, #tpu.memory_space<vmem>>) attributes {dimension_semantics = [], scalar_prefetch = 0 : i64, scratch_operands = 0 : i64, tpu.core_type = #tpu.core_type<tc>} {
    %c0 = arith.constant 0 : index
    %c0_0 = arith.constant 0 : index
    %0 = vector.load %arg0[%c0, %c0_0] : memref<8x11xbf16, #tpu.memory_space<vmem>>, vector<8x11xbf16>
    %c0_1 = arith.constant 0 : index
    %c0_2 = arith.constant 0 : index
    %1 = vector.load %arg1[%c0_1, %c0_2] : memref<11x1024xbf16, #tpu.memory_space<vmem>>, vector<11x1024xbf16>
    %cst = arith.constant dense<0.000000e+00> : vector<8x1024xf32>
    %2 = tpu.matmul %0, %1, %cst {dimension_numbers = #tpu.dot_dimension_numbers<[1], [0], [0], [1], [0, 0, 1, 1], [], []>} : vector<8x11xbf16>, vector<11x1024xbf16>, vector<8x1024xf32> -> vector<8x1024xf32>
    %c0_3 = arith.constant 0 : index
    %c0_4 = arith.constant 0 : index
    %3 = vector.load %arg2[%c0_3, %c0_4] : memref<1x1024xf32, #tpu.memory_space<vmem>>, vector<1x1024xf32>
    %4 = vector.broadcast %3 : vector<1x1024xf32> to vector<8x1024xf32>
    %5 = arith.addf %2, %4 : vector<8x1024xf32>
    %cst_5 = arith.constant 0.000000e+00 : f32
    %6 = vector.broadcast %cst_5 : f32 to vector<8x1024xf32>
    %7 = arith.maximumf %5, %6 : vector<8x1024xf32>
    %8 = arith.truncf %7 : vector<8x1024xf32> to vector<8x1024xbf16>
    %c0_6 = arith.constant 0 : index
    %c0_7 = arith.constant 0 : index
    %9 = vector.load %arg3[%c0_6, %c0_7] : memref<1024x512xbf16, #tpu.memory_space<vmem>>, vector<1024x512xbf16>
    %cst_8 = arith.constant dense<0.000000e+00> : vector<8x512xf32>
    %10 = tpu.matmul %8, %9, %cst_8 {dimension_numbers = #tpu.dot_dimension_numbers<[1], [0], [0], [1], [0, 0, 1, 1], [], []>} : vector<8x1024xbf16>, vector<1024x512xbf16>, vector<8x512xf32> -> vector<8x512xf32>
    %c0_9 = arith.constant 0 : index
    %c0_10 = arith.constant 0 : index
    %11 = vector.load %arg4[%c0_9, %c0_10] : memref<1x512xf32, #tpu.memory_space<vmem>>, vector<1x512xf32>
    %12 = vector.broadcast %11 : vector<1x512xf32> to vector<8x512xf32>
    %13 = arith.addf %10, %12 : vector<8x512xf32>
    %cst_11 = arith.constant 0.000000e+00 : f32
    %14 = vector.broadcast %cst_11 : f32 to vector<8x512xf32>
    %15 = arith.maximumf %13, %14 : vector<8x512xf32>
    %16 = arith.truncf %15 : vector<8x512xf32> to vector<8x512xbf16>
    %c0_12 = arith.constant 0 : index
    %c0_13 = arith.constant 0 : index
    %17 = vector.load %arg5[%c0_12, %c0_13] : memref<512x256xbf16, #tpu.memory_space<vmem>>, vector<512x256xbf16>
    %cst_14 = arith.constant dense<0.000000e+00> : vector<8x256xf32>
    %18 = tpu.matmul %16, %17, %cst_14 {dimension_numbers = #tpu.dot_dimension_numbers<[1], [0], [0], [1], [0, 0, 1, 1], [], []>} : vector<8x512xbf16>, vector<512x256xbf16>, vector<8x256xf32> -> vector<8x256xf32>
    %c0_15 = arith.constant 0 : index
    %c0_16 = arith.constant 0 : index
    %19 = vector.load %arg6[%c0_15, %c0_16] : memref<1x256xf32, #tpu.memory_space<vmem>>, vector<1x256xf32>
    %20 = vector.broadcast %19 : vector<1x256xf32> to vector<8x256xf32>
    %21 = arith.addf %18, %20 : vector<8x256xf32>
    %cst_17 = arith.constant 0.000000e+00 : f32
    %22 = vector.broadcast %cst_17 : f32 to vector<8x256xf32>
    %23 = arith.maximumf %21, %22 : vector<8x256xf32>
    %24 = arith.truncf %23 : vector<8x256xf32> to vector<8x256xbf16>
    %c0_18 = arith.constant 0 : index
    %c0_19 = arith.constant 0 : index
    %25 = vector.load %arg7[%c0_18, %c0_19] : memref<256x128xbf16, #tpu.memory_space<vmem>>, vector<256x128xbf16>
    %cst_20 = arith.constant dense<0.000000e+00> : vector<8x128xf32>
    %26 = tpu.matmul %24, %25, %cst_20 {dimension_numbers = #tpu.dot_dimension_numbers<[1], [0], [0], [1], [0, 0, 1, 1], [], []>} : vector<8x256xbf16>, vector<256x128xbf16>, vector<8x128xf32> -> vector<8x128xf32>
    %c0_21 = arith.constant 0 : index
    %c0_22 = arith.constant 0 : index
    %27 = vector.load %arg8[%c0_21, %c0_22] : memref<1x128xf32, #tpu.memory_space<vmem>>, vector<1x128xf32>
    %28 = vector.broadcast %27 : vector<1x128xf32> to vector<8x128xf32>
    %29 = arith.addf %26, %28 : vector<8x128xf32>
    %cst_23 = arith.constant dense<0xFF800000> : vector<8xf32>
    %30 = vector.multi_reduction <maximumf>, %29, %cst_23 [1] : vector<8x128xf32> to vector<8xf32>
    %31 = vector.shape_cast %30 : vector<8xf32> to vector<8x1xf32>
    %32 = vector.broadcast %31 : vector<8x1xf32> to vector<8x128xf32>
    %33 = arith.subf %29, %32 : vector<8x128xf32>
    %34 = math.exp %33 : vector<8x128xf32>
    %cst_24 = arith.constant dense<0.000000e+00> : vector<8xf32>
    %35 = vector.multi_reduction <add>, %34, %cst_24 [1] : vector<8x128xf32> to vector<8xf32>
    %36 = vector.shape_cast %35 : vector<8xf32> to vector<8x1xf32>
    %37 = vector.broadcast %36 : vector<8x1xf32> to vector<8x128xf32>
    %38 = arith.divf %34, %37 : vector<8x128xf32>
    %c0_25 = arith.constant 0 : index
    %c0_26 = arith.constant 0 : index
    %39 = vector.load %arg9[%c0_25, %c0_26] : memref<8x128xf32, #tpu.memory_space<vmem>>, vector<8x128xf32>
    tpu.vector_store %arg9[%c0_25, %c0_26], %38 {strides = array<i32>} : memref<8x128xf32, #tpu.memory_space<vmem>>, vector<8x128xf32>,
    return
  }
}

</mosaic_0001>

<bundles_post_ra>
// kernel: mlp_forward.1
= control target key start
LH: loop header
LB: loop body
LE: loop exit
PB: predicated region body
PF: predicated region fallthrough
CT: control target
= control target key end

     0   :  { %14 = vsyncpa [#allocation3], 0  ;;  %s4181_s0 = inlined_call_operand.vmem [shape: bf16[8,11], index: 0, kind: input, shape index: {}]   ;;  %s4182_s1 = inlined_call_operand.hbm [shape: bf16[11,1024], index: 1, kind: input, shape index: {}]   ;;  %s4183_s2 = inlined_call_operand.vmem [shape: f32[1,1024], index: 2, kind: input, shape index: {}]   ;;  %s4184_s3 = inlined_call_operand.hbm [shape: bf16[1024,512], index: 3, kind: input, shape index: {}]   ;;  %s4185_s4 = inlined_call_operand.vmem [shape: f32[1,512], index: 4, kind: input, shape index: {}]   ;;  %s4186_s5 = inlined_call_operand.hbm [shape: bf16[512,256], index: 5, kind: input, shape index: {}]   ;;  %s4187_s6 = inlined_call_operand.vmem [shape: f32[1,256], index: 6, kind: input, shape index: {}]   ;;  %s4188_s7 = inlined_call_operand.hbm [shape: bf16[256,128], index: 7, kind: input, shape index: {}]   ;;  %s4189_s8 = inlined_call_operand.vmem [shape: f32[1,128], index: 8, kind: input, shape index: {}]   ;;  %s4190_s9 = inlined_call_operand.vmem [shape: f32[8,128], index: 9, kind: output, shape index: {}]  }
   0x1   :  { %15 = vsyncpa [#allocation5], 0 }
   0x2   :  { %16 = vsyncpa [#allocation8], 0  ;;  %s3962_s30 = smov [#allocation4]   ;;  %s3868_s13 = scalar_lea.hbm %s4184_s3, 32768 }
   0x3   :  { %s38_s10 = sshll.u32 %s3962_s30, 4  ;;  %p3869_p0 = scmp.ne.s32.totalorder %s4184_s3, %s3868_s13  ;;  %s39_s10 = int_to_ptr.vmem [resolvable:$true] %s38_s10 }
   0x4   :  { %p3872_p1 = scmp.lt.u32.totalorder %s3868_s13, %s4184_s3 }
   0x6   :  { %p3874_p2 = pnand %p3872_p1, %p3869_p0 }
   0x8   :  { %3877 = shalt.err (!%p3874_p2)
}
   0x9   :  { %s3878_s18 = scalar_lea.vmem %s39_s10, 32768  ;;  %p3883_p4 = scmp.lt.s32.totalorder %s39_s10, %s39_s10 }
   0xa   :  { %p3879_p3 = scmp.ne.s32.totalorder %s39_s10, %s3878_s18  ;;  %p3884_p5 = scmp.lt.s32.totalorder %s3878_s18, %s3878_s18 }
   0xc   :  { %p3885_p6 = por %p3884_p5, %p3883_p4 }
   0xe   :  { %p3886_p7 = pnand %p3885_p6, %p3879_p3 }
  0x10   :  { %3889 = shalt.err (!%p3886_p7)
}
  0x11   :  { %s3963_s19 = smov 256   ;;  %s3964_s20 = smov 16  }
  0x12   :  { %44 = dma.hbm_to_vmem [thread:$0]  %s4184_s3, 32768, %s39_s10, [#allocation5], %s3963_s19, %s3963_s19, %s3964_s20  }
  0x13   :  { %s3965_s23 = smov [#allocation2]   ;;  %s3890_s27 = scalar_lea.hbm %s4182_s1, 1024 }
  0x14   :  { %s24_s24 = sshll.u32 %s3965_s23, 4  ;;  %p3891_p8 = scmp.ne.s32.totalorder %s4182_s1, %s3890_s27  ;;  %s25_s24 = int_to_ptr.vmem [resolvable:$true] %s24_s24 }
  0x15   :  { %p3894_p9 = scmp.lt.u32.totalorder %s3890_s27, %s4182_s1 }
  0x17   :  { %p3896_p10 = pnand %p3894_p9, %p3891_p8 }
  0x19   :  { %3899 = shalt.err (!%p3896_p10)
}
  0x1a   :  { %s3900_s12 = scalar_lea.vmem %s25_s24, 1024  ;;  %p3905_p12 = scmp.lt.s32.totalorder %s25_s24, %s25_s24 }
  0x1b   :  { %p3901_p11 = scmp.ne.s32.totalorder %s25_s24, %s3900_s12  ;;  %p3906_p13 = scmp.lt.s32.totalorder %s3900_s12, %s3900_s12 }
  0x1d   :  { %p3907_p0 = por %p3906_p13, %p3905_p12 }
  0x1f   :  { %p3908_p1 = pnand %p3907_p0, %p3901_p11 }
  0x21   :  { %3911 = shalt.err (!%p3908_p1)
}
  0x22   :  { %s3966_s3 = smov 512   ;;  %s3967_s10 = smov 32  }
  0x23   :  { %30 = dma.hbm_to_vmem [thread:$0]  %s4182_s1, 1024, %s25_s24, [#allocation3], %s3966_s3, %s3966_s3, %s3967_s10  }
  0x24   :  { %s3968_s15 = smov [#allocation6]   ;;  %s3912_s19 = scalar_lea.hbm %s4186_s5, 8192 }
  0x25   :  { %s52_s16 = sshll.u32 %s3968_s15, 4  ;;  %p3913_p2 = scmp.ne.s32.totalorder %s4186_s5, %s3912_s19  ;;  %s53_s16 = int_to_ptr.vmem [resolvable:$true] %s52_s16 }
  0x26   :  { %p3916_p3 = scmp.lt.u32.totalorder %s3912_s19, %s4186_s5 }
  0x28   :  { %p3918_p4 = pnand %p3916_p3, %p3913_p2 }
  0x2a   :  { %3921 = shalt.err (!%p3918_p4)
}
  0x2b   :  { %s3922_s25 = scalar_lea.vmem %s53_s16, 8192  ;;  %p3927_p6 = scmp.lt.s32.totalorder %s53_s16, %s53_s16 }
  0x2c   :  { %p3923_p5 = scmp.ne.s32.totalorder %s53_s16, %s3922_s25  ;;  %p3928_p7 = scmp.lt.s32.totalorder %s3922_s25, %s3922_s25 }
  0x2e   :  { %p3929_p8 = por %p3928_p7, %p3927_p6 }
  0x30   :  { %p3930_p9 = pnand %p3929_p8, %p3923_p5 }
  0x32   :  { %3933 = shalt.err (!%p3930_p9)
}
  0x33   :  { %s3969_s1 = smov 128   ;;  %s3970_s24 = smov 8  }
  0x34   :  { %58 = dma.hbm_to_vmem [thread:$0]  %s4186_s5, 8192, %s53_s16, [#allocation5], %s3969_s1, %s3969_s1, %s3970_s24  }
  0x35   :  { %s3971_s28 = smov [#allocation7]   ;;  %s3934_s12 = scalar_lea.hbm %s4188_s7, 2048 }
  0x36   :  { %s66_s29 = sshll.u32 %s3971_s28, 4  ;;  %p3935_p10 = scmp.ne.s32.totalorder %s4188_s7, %s3934_s12  ;;  %s67_s29 = int_to_ptr.vmem [resolvable:$true] %s66_s29 }
  0x37   :  { %p3938_p11 = scmp.lt.u32.totalorder %s3934_s12, %s4188_s7 }
  0x39   :  { %p3940_p12 = pnand %p3938_p11, %p3935_p10 }
  0x3b   :  { %3943 = shalt.err (!%p3940_p12)
}
  0x3c   :  { %s3944_s15 = scalar_lea.vmem %s67_s29, 2048  ;;  %p3949_p0 = scmp.lt.s32.totalorder %s67_s29, %s67_s29 }
  0x3d   :  { %p3945_p13 = scmp.ne.s32.totalorder %s67_s29, %s3944_s15  ;;  %p3950_p1 = scmp.lt.s32.totalorder %s3944_s15, %s3944_s15 }
  0x3f   :  { %p3951_p2 = por %p3950_p1, %p3949_p0 }
  0x41   :  { %p3952_p3 = pnand %p3951_p2, %p3945_p13 }
  0x43   :  { %3955 = shalt.err (!%p3952_p3)
}
  0x44   :  { %s3972_s5 = smov 64   ;;  %s3973_s16 = smov 4  }
  0x45   :  { %72 = dma.hbm_to_vmem [thread:$0]  %s4188_s7, 2048, %s67_s29, [#allocation8], %s3972_s5, %s3972_s5, %s3973_s16  }
  0x46   :  { %3956 = dma.done.wait [#allocation3], 1024  }
  0x47   :  { %3957 = vsyncadd [#allocation3], 4294966272 }
  0x48   :  { %3958 = dma.done.wait [#allocation5], 40960  }
  0x49   :  { %3959 = vsyncadd [#allocation5], 4294926336 }
  0x4a   :  { %3960 = dma.done.wait [#allocation8], 2048  }
  0x4b   :  { %3961 = vsyncadd [#allocation8], 4294965248  ;;  %vm175_vm0 = vcmask 1044480   ;;  %v3974_v0 = vmov 0   ;;  %vm176_vm1 = vcmask 1045504   ;;  %v3975_v1 = vmov 65535  }
  0x4c   :  { %235 = vmatprep.mubr.bf16.mxu0 %v3974_v0  ;;  %v177_v2 = vsel %vm175_vm0, 4294967295, %v3975_v1  ;;  %v89_v3 = vld [vmem:[#allocation2] sm:$0xff]  ;;  %v90_v8 = vld [vmem:[#allocation2 + $0x8] sm:$0xff]  ;;  %v91_v10 = vld [vmem:[#allocation2 + $0x10] sm:$0xff]  ;;  %vm171_vm2 = vcmask 89088  }
  0x4d   :  { %v93_v4 = vld [vmem:[#allocation2 + $0x20] sm:$0x33]  ;;  %v178_v5 = vsel %vm176_vm1, %v177_v2, 0  ;;  %v94_v9 = vld [vmem:[#allocation2 + $0x28] sm:$0x33]  ;;  %v92_v23 = vld [vmem:[#allocation2 + $0x18] sm:$0xff] }
  0x4e   :  { %v2952_v6 = vcombine.high %v89_v3, %v93_v4  ;;  %v2951_v7 = vcombine.low %v89_v3, %v93_v4  ;;  %v2953_v11 = vcombine.low %v90_v8, %v94_v9  ;;  %v2954_v12 = vcombine.high %v90_v8, %v94_v9  ;;  %v95_v13 = vld [vmem:[#allocation2 + $0x30] sm:$0x33]  ;;  %v88_v20 = vld [vmem:[%s4181_s0] sm:$0xf]  ;;  %v96_v25 = vld [vmem:[#allocation2 + $0x38] sm:$0x33] }
  0x4f   :  { %v2956_v16 = vcombine.high %v91_v10, %v95_v13  ;;  %v3368_v17 = vld [vmem:[#allocation4 + $0x4] ss:$16 sps:$4 sm:$0xff]   ;;  %v3370_v19 = vld [vmem:[#allocation4] ss:$16 sps:$4 sm:$0xff]   ;;  %v2955_v28 = vcombine.low %v91_v10, %v95_v13  ;;  %v2958_v29 = vcombine.high %v92_v23, %v96_v25  ;;  %v2957_v36 = vcombine.low %v92_v23, %v96_v25 }
  0x50   :  { %v183_v14 = vand.u32 %v2952_v6, %v178_v5  ;;  %v180_v15 = vand.u32 %v2951_v7, %v178_v5  ;;  %v189_v18 = vand.u32 %v2954_v12, %v178_v5  ;;  %1941 = vmatprep.subr.bf16.mxu1 %v3368_v17  ;;  %v3371_v21 = vld [vmem:[#allocation4 + $0x24] ss:$16 sps:$4 sm:$0xff]   ;;  %v186_v22 = vand.u32 %v2953_v11, %v178_v5  ;;  %v3373_v26 = vld [vmem:[#allocation4 + $0x20] ss:$16 sps:$4 sm:$0xff]  }
  0x51   :  { %1942 = vmatpush1.bf16.msra.mxu1 %v3370_v19  ;;  %v195_v24 = vand.u32 %v2956_v16, %v178_v5  ;;  %v3374_v27 = vld [vmem:[#allocation4 + $0x44] ss:$16 sps:$4 sm:$0xff]   ;;  %v3379_v30 = vld [vmem:[#allocation4 + $0x40] ss:$16 sps:$4 sm:$0xff]   ;;  %v192_v32 = vand.u32 %v2955_v28, %v178_v5  ;;  %v201_v33 = vand.u32 %v2958_v29, %v178_v5  ;;  %v198_v39 = vand.u32 %v2957_v36, %v178_v5 }
  0x52   :  { %203 = vmatprep.subr.bf16.mxu0 %v183_v14  ;;  %1943 = vmatprep.subr.bf16.mxu1 %v3371_v21  ;;  %v3380_v31 = vld [vmem:[#allocation4 + $0x64] ss:$16 sps:$4 sm:$0xff]   ;;  %v3385_v34 = vld [vmem:[#allocation4 + $0x60] ss:$16 sps:$4 sm:$0xff]  }
  0x53   :  { %204 = vmatpush1.bf16.msra.mxu0 %v180_v15  ;;  %v3386_v35 = vld [vmem:[#allocation4 + $0x84] ss:$16 sps:$4 sm:$0xff]   ;;  %v3391_v37 = vld [vmem:[#allocation4 + $0x80] ss:$16 sps:$4 sm:$0xff]  }
  0x54   :  { %244 = vmatprep.subr.bf16.mxu0 %v189_v18  ;;  %v3392_v38 = vld [vmem:[#allocation4 + $0xa4] ss:$16 sps:$4 sm:$0xff]   ;;  %v3397_v41 = vld [vmem:[#allocation4 + $0xa0] ss:$16 sps:$4 sm:$0xff]  }
  0x55   :  { %1944 = vmatpush1.bf16.msra.mxu1 %v3373_v26  ;;  %v3378_v40 = vld [vmem:[#allocation4 + $0x204] ss:$16 sps:$4 sm:$0xff]   ;;  %v3403_v43 = vld [vmem:[#allocation4 + $0xc0] ss:$16 sps:$4 sm:$0xff]   ;;  %v3463_v26 = vld [vmem:[#allocation4 + $0xc] ss:$16 sps:$4 sm:$0xff]  }
  0x56   :  { %2959 = vmatmul.mubr.msk.bf16.vlgmr.msra.gmra.mrb[0].mxu0 %vm171_vm2, %v88_v20  ;;  %1945 = vmatprep.subr.bf16.mxu1 %v3374_v27  ;;  %v3398_v42 = vld [vmem:[#allocation4 + $0xc4] ss:$16 sps:$4 sm:$0xff]   ;;  %v3376_v45 = vld [vmem:[#allocation4 + $0x200] ss:$16 sps:$4 sm:$0xff]  }
  0x57   :  { %245 = vmatpush1.bf16.msra.mxu0 %v186_v22  ;;  %276 = vmatprep.mubr.bf16.mxu0 %v3974_v0  ;;  %v3404_v44 = vld [vmem:[#allocation4 + $0xe4] ss:$16 sps:$4 sm:$0xff]   ;;  %v3409_v47 = vld [vmem:[#allocation4 + $0xe0] ss:$16 sps:$4 sm:$0xff]  }
  0x58   :  { %285 = vmatprep.subr.bf16.mxu0 %v195_v24  ;;  %v3384_v46 = vld [vmem:[#allocation4 + $0x224] ss:$16 sps:$4 sm:$0xff]   ;;  %v3382_v49 = vld [vmem:[#allocation4 + $0x220] ss:$16 sps:$4 sm:$0xff]  }
  0x59   :  { %1946 = vmatpush1.bf16.msra.mxu1 %v3379_v30  ;;  %v3410_v48 = vld [vmem:[#allocation4 + $0x104] ss:$16 sps:$4 sm:$0xff]   ;;  %v3415_v51 = vld [vmem:[#allocation4 + $0x100] ss:$16 sps:$4 sm:$0xff]  }
  0x5a   :  { %1947 = vmatprep.subr.bf16.mxu1 %v3380_v31  ;;  %v3390_v50 = vld [vmem:[#allocation4 + $0x244] ss:$16 sps:$4 sm:$0xff]   ;;  %v3388_v53 = vld [vmem:[#allocation4 + $0x240] ss:$16 sps:$4 sm:$0xff]   ;;  %v99_v31 = vlaneseq }
  0x5b   :  { %v3416_v52 = vld [vmem:[#allocation4 + $0x124] ss:$16 sps:$4 sm:$0xff]   ;;  %v3421_v55 = vld [vmem:[#allocation4 + $0x120] ss:$16 sps:$4 sm:$0xff]  }
  0x5c   :  { %v3396_v54 = vld [vmem:[#allocation4 + $0x264] ss:$16 sps:$4 sm:$0xff]   ;;  %v3394_v57 = vld [vmem:[#allocation4 + $0x260] ss:$16 sps:$4 sm:$0xff]  }
  0x5d   :  { %1948 = vmatpush1.bf16.msra.mxu1 %v3385_v34  ;;  %v3422_v56 = vld [vmem:[#allocation4 + $0x144] ss:$16 sps:$4 sm:$0xff]   ;;  %v3427_v59 = vld [vmem:[#allocation4 + $0x140] ss:$16 sps:$4 sm:$0xff]  }
  0x5e   :  { %2960 = vmatmul.mubr.msk.bf16.vlgmr.msra.gmra.mrb[4].mxu0 %vm171_vm2, %v88_v20  ;;  %1949 = vmatprep.subr.bf16.mxu1 %v3386_v35  ;;  %v3402_v58 = vld [vmem:[#allocation4 + $0x284] ss:$16 sps:$4 sm:$0xff]   ;;  %v3400_v61 = vld [vmem:[#allocation4 + $0x280] ss:$16 sps:$4 sm:$0xff]  }
  0x5f   :  { %286 = vmatpush1.bf16.msra.mxu0 %v192_v32  ;;  %317 = vmatprep.mubr.bf16.mxu0 %v3974_v0  ;;  %v3428_v60 = vld [vmem:[#allocation4 + $0x164] ss:$16 sps:$4 sm:$0xff]   ;;  %v3433_v63 = vld [vmem:[#allocation4 + $0x160] ss:$16 sps:$4 sm:$0xff]   ;;  %v4085_v32 = vshrl.u32 %v99_v31, 7 }
  0x60   :  { %326 = vmatprep.subr.bf16.mxu0 %v201_v33  ;;  %v3408_v62 = vld [vmem:[#allocation4 + $0x2a4] ss:$16 sps:$4 sm:$0xff]   ;;  %v3406_v1 = vld [vmem:[#allocation4 + $0x2a0] ss:$16 sps:$4 sm:$0xff]  }
  0x61   :  { %1950 = vmatpush1.bf16.msra.mxu1 %v3391_v37  ;;  %v3414_v2 = vld [vmem:[#allocation4 + $0x2c4] ss:$16 sps:$4 sm:$0xff]   ;;  %v3439_v3 = vld [vmem:[#allocation4 + $0x180] ss:$16 sps:$4 sm:$0xff]   ;;  %v4088_v33 = vsub.s32 0, %v4085_v32  ;;  %v4096_v35 = vsub.s32 1, %v4085_v32 }
  0x62   :  { %1951 = vmatprep.subr.bf16.mxu1 %v3392_v38  ;;  %v3440_v4 = vld [vmem:[#allocation4 + $0x1a4] ss:$16 sps:$4 sm:$0xff]   ;;  %v3412_v5 = vld [vmem:[#allocation4 + $0x2c0] ss:$16 sps:$4 sm:$0xff]  }
  0x63   :  { %v3420_v6 = vld [vmem:[#allocation4 + $0x2e4] ss:$16 sps:$4 sm:$0xff]   ;;  %v3445_v7 = vld [vmem:[#allocation4 + $0x1a0] ss:$16 sps:$4 sm:$0xff]  }
  0x64   :  { %v3418_v8 = vld [vmem:[#allocation4 + $0x2e0] ss:$16 sps:$4 sm:$0xff]   ;;  %v3426_v9 = vld [vmem:[#allocation4 + $0x304] ss:$16 sps:$4 sm:$0xff]  }
  0x65   :  { %1952 = vmatpush1.bf16.msra.mxu1 %v3397_v41  ;;  %v3424_v10 = vld [vmem:[#allocation4 + $0x300] ss:$16 sps:$4 sm:$0xff]   ;;  %v3432_v11 = vld [vmem:[#allocation4 + $0x324] ss:$16 sps:$4 sm:$0xff]   ;;  %v109_v41 = vsub.s32 2, %v4085_v32 }
  0x66   :  { %2961 = vmatmul.mubr.msk.bf16.vlgmr.msra.gmra.mrb[8].mxu0 %vm171_vm2, %v88_v20  ;;  %1953 = vmatprep.subr.bf16.mxu1 %v3398_v42  ;;  %v3430_v12 = vld [vmem:[#allocation4 + $0x320] ss:$16 sps:$4 sm:$0xff]   ;;  %v3438_v13 = vld [vmem:[#allocation4 + $0x344] ss:$16 sps:$4 sm:$0xff]  }
  0x67   :  { %327 = vmatpush1.bf16.msra.mxu0 %v198_v39  ;;  %358 = vmatprep.mubr.bf16.mxu0 %v3974_v0  ;;  %v3434_v0 = vld [vmem:[#allocation4 + $0x184] ss:$16 sps:$4 sm:$0xff]   ;;  %v3436_v14 = vld [vmem:[#allocation4 + $0x340] ss:$16 sps:$4 sm:$0xff]  }
  0x68   :  { %1982 = vmatprep.subr.bf16.mxu0 %v3378_v40  ;;  %v3444_v15 = vld [vmem:[#allocation4 + $0x364] ss:$16 sps:$4 sm:$0xff]   ;;  %v3442_v16 = vld [vmem:[#allocation4 + $0x360] ss:$16 sps:$4 sm:$0xff]  }
  0x69   :  { %1954 = vmatpush1.bf16.msra.mxu1 %v3403_v43  ;;  %v3446_v17 = vld [vmem:[#allocation4 + $0x1c4] ss:$16 sps:$4 sm:$0xff]   ;;  %v3448_v19 = vld [vmem:[#allocation4 + $0x380] ss:$16 sps:$4 sm:$0xff]  }
  0x6a   :  { %1955 = vmatprep.subr.bf16.mxu1 %v3404_v44  ;;  %v3450_v18 = vld [vmem:[#allocation4 + $0x384] ss:$16 sps:$4 sm:$0xff]   ;;  %v3454_v23 = vld [vmem:[#allocation4 + $0x3a0] ss:$16 sps:$4 sm:$0xff]   ;;  %v113_v44 = vsub.s32 3, %v4085_v32 }
  0x6b   :  { %v3452_v21 = vld [vmem:[#allocation4 + $0x1e4] ss:$16 sps:$4 sm:$0xff]   ;;  %v3457_v24 = vld [vmem:[#allocation4 + $0x1e0] ss:$16 sps:$4 sm:$0xff]  }
  0x6c   :  { %v3456_v22 = vld [vmem:[#allocation4 + $0x3a4] ss:$16 sps:$4 sm:$0xff]   ;;  %v3458_v27 = vld [vmem:[#allocation4 + $0x3c0] ss:$16 sps:$4 sm:$0xff]  }
  0x6d   :  { %1956 = vmatpush1.bf16.msra.mxu1 %v3409_v47  ;;  %v3460_v25 = vld [vmem:[#allocation4 + $0x3c4] ss:$16 sps:$4 sm:$0xff]   ;;  %v3464_v29 = vld [vmem:[#allocation4 + $0x3e0] ss:$16 sps:$4 sm:$0xff]  }
  0x6e   :  { %2962 = vmatmul.mubr.msk.bf16.vlgmr.msra.gmra.mrb[12].mxu0 %vm171_vm2, %v88_v20  ;;  %1957 = vmatprep.subr.bf16.mxu1 %v3410_v48  ;;  %v3451_v20 = vld [vmem:[#allocation4 + $0x1c0] ss:$16 sps:$4 sm:$0xff]   ;;  %v3466_v28 = vld [vmem:[#allocation4 + $0x3e4] ss:$16 sps:$4 sm:$0xff]  }
  0x6f   :  { %1983 = vmatpush1.bf16.msra.mxu0 %v3376_v45  ;;  %v3472_v30 = vld [vmem:[#allocation4 + $0x404] ss:$16 sps:$4 sm:$0xff]   ;;  %v3494_v31 = vld [vmem:[#allocation4 + $0x480] ss:$16 sps:$4 sm:$0xff]  }
  0x70   :  { %1984 = vmatprep.subr.bf16.mxu0 %v3384_v46  ;;  %v4093_v34 = vld [vmem:[%s4183_s2] sm:$0xff] }
  0x71   :  { %1958 = vmatpush1.bf16.msra.mxu1 %v3415_v51  ;;  %v102_v36 = vrot.slane %v4093_v34, %v4088_v33  ;;  %v106_v37 = vrot.slane %v4093_v34, %v4096_v35  ;;  %v110_v48 = vrot.slane %v4093_v34, %v109_v41  ;;  %v114_v51 = vrot.slane %v4093_v34, %v113_v44 }
  0x72   :  { %1959 = vmatprep.subr.bf16.mxu1 %v3416_v52 }
  0x73   :  { %1985 = vmatpush1.bf16.msra.mxu0 %v3382_v49 }
  0x74   :  { %1986 = vmatprep.subr.bf16.mxu0 %v3390_v50  ;;  %v3461_v50 = vld [vmem:[#allocation4 + $0x8] ss:$16 sps:$4 sm:$0xff]  }
  0x75   :  { %1960 = vmatpush1.bf16.msra.mxu1 %v3421_v55 }
  0x76   :  { %1961 = vmatprep.subr.bf16.mxu1 %v3422_v56 }
  0x77   :  { %1987 = vmatpush1.bf16.msra.mxu0 %v3388_v53  ;;  %v3469_v53 = vld [vmem:[#allocation4 + $0x2c] ss:$16 sps:$4 sm:$0xff]  }
  0x78   :  { %1988 = vmatprep.subr.bf16.mxu0 %v3396_v54 }
  0x79   :  { %1962 = vmatpush1.bf16.msra.mxu1 %v3427_v59 }
  0x7a   :  { %1963 = vmatprep.subr.bf16.mxu1 %v3428_v60  ;;  %v121_v60 = vsub.s32 5, %v4085_v32 }
  0x7b   :  { %1989 = vmatpush1.bf16.msra.mxu0 %v3394_v57 }
  0x7c   :  { %1990 = vmatprep.subr.bf16.mxu0 %v3402_v58  ;;  %v3467_v58 = vld [vmem:[#allocation4 + $0x28] ss:$16 sps:$4 sm:$0xff]  }
  0x7d   :  { %1964 = vmatpush1.bf16.msra.mxu1 %v3433_v63 }
  0x7e   :  { %1965 = vmatprep.subr.bf16.mxu1 %v3434_v0 }
  0x7f   :  { %1991 = vmatpush1.bf16.msra.mxu0 %v3400_v61 }
  0x80   :  { %1992 = vmatprep.subr.bf16.mxu0 %v3408_v62  ;;  %v3475_v62 = vld [vmem:[#allocation4 + $0x4c] ss:$16 sps:$4 sm:$0xff]  }
  0x81   :  { %1966 = vmatpush1.bf16.msra.mxu1 %v3439_v3  ;;  %v3470_v3 = vld [vmem:[#allocation4 + $0x400] ss:$16 sps:$4 sm:$0xff]  }
  0x82   :  { %1967 = vmatprep.subr.bf16.mxu1 %v3440_v4  ;;  %v3473_v4 = vld [vmem:[#allocation4 + $0x48] ss:$16 sps:$4 sm:$0xff]  }
  0x83   :  { %1993 = vmatpush1.bf16.msra.mxu0 %v3406_v1 }
  0x84   :  { %1994 = vmatprep.subr.bf16.mxu0 %v3414_v2 }
  0x85   :  { %1968 = vmatpush1.bf16.msra.mxu1 %v3445_v7  ;;  %v3481_v7 = vld [vmem:[#allocation4 + $0x6c] ss:$16 sps:$4 sm:$0xff]  }
  0x86   :  { %1969 = vmatprep.subr.bf16.mxu1 %v3446_v17 }
  0x87   :  { %1995 = vmatpush1.bf16.msra.mxu0 %v3412_v5  ;;  %v122_v5 = vrot.slane %v4093_v34, %v121_v60  ;;  %v3532_v60 = vld [vmem:[#allocation4 + $0x544] ss:$16 sps:$4 sm:$0xff]  }
  0x88   :  { %1996 = vmatprep.subr.bf16.mxu0 %v3420_v6  ;;  %v3478_v6 = vld [vmem:[#allocation4 + $0x424] ss:$16 sps:$4 sm:$0xff]  }
  0x89   :  { %1970 = vmatpush1.bf16.msra.mxu1 %v3451_v20 }
  0x8a   :  { %1971 = vmatprep.subr.bf16.mxu1 %v3452_v21  ;;  %v3490_v21 = vld [vmem:[#allocation4 + $0x464] ss:$16 sps:$4 sm:$0xff]  }
  0x8b   :  { %1997 = vmatpush1.bf16.msra.mxu0 %v3418_v8 }
  0x8c   :  { %1998 = vmatprep.subr.bf16.mxu0 %v3426_v9 }
  0x8d   :  { %1972 = vmatpush1.bf16.msra.mxu1 %v3457_v24 }
  0x8e   :  { %2105 = vmatprep.subr.bf16.mxu1 %v3463_v26  ;;  %v3491_v26 = vld [vmem:[#allocation4 + $0xa8] ss:$16 sps:$4 sm:$0xff]  }
  0x8f   :  { %1999 = vmatpush1.bf16.msra.mxu0 %v3424_v10  ;;  %v3476_v10 = vld [vmem:[#allocation4 + $0x420] ss:$16 sps:$4 sm:$0xff]  }
  0x90   :  { %2000 = vmatprep.subr.bf16.mxu0 %v3432_v11  ;;  %v3479_v11 = vld [vmem:[#allocation4 + $0x68] ss:$16 sps:$4 sm:$0xff]  }
  0x93   :  { %2001 = vmatpush1.bf16.msra.mxu0 %v3430_v12 }
  0x94   :  { %2002 = vmatprep.subr.bf16.mxu0 %v3438_v13 }
  0x97   :  { %2003 = vmatpush1.bf16.msra.mxu0 %v3436_v14  ;;  %v3484_v14 = vld [vmem:[#allocation4 + $0x444] ss:$16 sps:$4 sm:$0xff]  }
  0x98   :  { %2004 = vmatprep.subr.bf16.mxu0 %v3444_v15  ;;  %v3487_v15 = vld [vmem:[#allocation4 + $0x8c] ss:$16 sps:$4 sm:$0xff]  }
  0x9b   :  { %2005 = vmatpush1.bf16.msra.mxu0 %v3442_v16 }
  0x9c   :  { %2006 = vmatprep.subr.bf16.mxu0 %v3450_v18  ;;  %v3482_v18 = vld [vmem:[#allocation4 + $0x440] ss:$16 sps:$4 sm:$0xff]  }
  0x9f   :  { %2007 = vmatpush1.bf16.msra.mxu0 %v3448_v19  ;;  %v3485_v19 = vld [vmem:[#allocation4 + $0x88] ss:$16 sps:$4 sm:$0xff]  }
  0xa0   :  { %2008 = vmatprep.subr.bf16.mxu0 %v3456_v22  ;;  %v3493_v22 = vld [vmem:[#allocation4 + $0xac] ss:$16 sps:$4 sm:$0xff]  }
  0xa3   :  { %2009 = vmatpush1.bf16.msra.mxu0 %v3454_v23 }
  0xa4   :  { %2010 = vmatprep.subr.bf16.mxu0 %v3460_v25  ;;  %v3488_v25 = vld [vmem:[#allocation4 + $0x460] ss:$16 sps:$4 sm:$0xff]  }
  0xa7   :  { %2011 = vmatpush1.bf16.msra.mxu0 %v3458_v27 }
  0xa8   :  { %2012 = vmatprep.subr.bf16.mxu0 %v3466_v28  ;;  %v3496_v28 = vld [vmem:[#allocation4 + $0x484] ss:$16 sps:$4 sm:$0xff]  }
  0xab   :  { %2013 = vmatpush1.bf16.msra.mxu0 %v3464_v29  ;;  %v3499_v29 = vld [vmem:[#allocation4 + $0xcc] ss:$16 sps:$4 sm:$0xff]  }
  0xac   :  { %2023 = vmatprep.subr.bf16.mxu0 %v3472_v30 }
 0x129   :  { %v237_v38 = vpop.f32.mrb[0].mxu0 }
 0x12a   :  { %v238_v39 = vadd.f32 %v237_v38, %v102_v36  ;;  %v239_v40 = vpop.f32.mrb[1].mxu0  ;;  %v3497_v36 = vld [vmem:[#allocation4 + $0xc8] ss:$16 sps:$4 sm:$0xff]   ;;  %v3505_v38 = vld [vmem:[#allocation4 + $0xec] ss:$16 sps:$4 sm:$0xff]  }
 0x12b   :  { %v240_v42 = vadd.f32 %v239_v40, %v106_v37  ;;  %v241_v43 = vpop.f32.mrb[2].mxu0  ;;  %v3502_v37 = vld [vmem:[#allocation4 + $0x4a4] ss:$16 sps:$4 sm:$0xff]   ;;  %v3503_v40 = vld [vmem:[#allocation4 + $0xe8] ss:$16 sps:$4 sm:$0xff]  }
 0x12c   :  { %v367_v45 = vmax.f32 %v238_v39, 0.0  ;;  %v242_v46 = vpop.f32.mrb[3].mxu0  ;;  %v3500_v39 = vld [vmem:[#allocation4 + $0x4a0] ss:$16 sps:$4 sm:$0xff]   ;;  %v3511_v43 = vld [vmem:[#allocation4 + $0x10c] ss:$16 sps:$4 sm:$0xff]  }
 0x12d   :  { %v368_v47 = vmax.f32 %v240_v42, 0.0  ;;  %v3508_v42 = vld [vmem:[#allocation4 + $0x4c4] ss:$16 sps:$4 sm:$0xff]   ;;  %v3509_v46 = vld [vmem:[#allocation4 + $0x108] ss:$16 sps:$4 sm:$0xff]  }
 0x12e   :  { %v4110_v52 = vpack.c.bf16 %v367_v45, %v367_v45  ;;  %v3506_v45 = vld [vmem:[#allocation4 + $0x4c0] ss:$16 sps:$4 sm:$0xff]  }
 0x12f   :  { %v376_v49 = vpack.c.bf16 %v368_v47, %v368_v47  ;;  %v3514_v47 = vld [vmem:[#allocation4 + $0x4e4] ss:$16 sps:$4 sm:$0xff]  }
 0x131   :  { %v278_v54 = vpop.f32.mrb[4].mxu0  ;;  %1973 = vmatprep.mubr.bf16.mxu1 %v376_v49 }
 0x132   :  { %v279_v55 = vadd.f32 %v278_v54, %v110_v48  ;;  %v280_v56 = vpop.f32.mrb[5].mxu0  ;;  %1974 = vmatmul.mubr.bf16.vlgmr.msra.gmra.mrb[0].mxu1 %v4110_v52  ;;  %v3517_v48 = vld [vmem:[#allocation4 + $0x12c] ss:$16 sps:$4 sm:$0xff]   ;;  %v3518_v54 = vld [vmem:[#allocation4 + $0x500] ss:$16 sps:$4 sm:$0xff]  }
 0x133   :  { %v281_v57 = vadd.f32 %v280_v56, %v114_v51  ;;  %2106 = vmatpush1.bf16.msra.mxu1 %v3461_v50  ;;  %2137 = vmatprep.mubr.bf16.mxu1 %v376_v49  ;;  %v282_v59 = vpop.f32.mrb[6].mxu0  ;;  %v3512_v49 = vld [vmem:[#allocation4 + $0x4e0] ss:$16 sps:$4 sm:$0xff]   ;;  %v3515_v50 = vld [vmem:[#allocation4 + $0x128] ss:$16 sps:$4 sm:$0xff]  }
 0x134   :  { %v369_v61 = vmax.f32 %v279_v55, 0.0  ;;  %2107 = vmatprep.subr.bf16.mxu1 %v3469_v53  ;;  %v283_v63 = vpop.f32.mrb[7].mxu0  ;;  %v3520_v51 = vld [vmem:[#allocation4 + $0x504] ss:$16 sps:$4 sm:$0xff]   ;;  %v3523_v53 = vld [vmem:[#allocation4 + $0x14c] ss:$16 sps:$4 sm:$0xff]  }
 0x135   :  { %v370_v0 = vmax.f32 %v281_v57, 0.0  ;;  %v3521_v55 = vld [vmem:[#allocation4 + $0x148] ss:$16 sps:$4 sm:$0xff]   ;;  %v3526_v56 = vld [vmem:[#allocation4 + $0x524] ss:$16 sps:$4 sm:$0xff]  }
 0x136   :  { %v4114_v1 = vpack.c.bf16 %v369_v61, %v369_v61  ;;  %v3529_v57 = vld [vmem:[#allocation4 + $0x16c] ss:$16 sps:$4 sm:$0xff]   ;;  %v3527_v59 = vld [vmem:[#allocation4 + $0x168] ss:$16 sps:$4 sm:$0xff]  }
 0x137   :  { %v4116_v2 = vpack.c.bf16 %v370_v0, %v370_v0  ;;  %2108 = vmatpush1.bf16.msra.mxu1 %v3467_v58  ;;  %v3524_v58 = vld [vmem:[#allocation4 + $0x520] ss:$16 sps:$4 sm:$0xff]   ;;  %v3535_v61 = vld [vmem:[#allocation4 + $0x18c] ss:$16 sps:$4 sm:$0xff]   ;;  %v3533_v63 = vld [vmem:[#allocation4 + $0x188] ss:$16 sps:$4 sm:$0xff]  }
 0x138   :  { %2109 = vmatprep.subr.bf16.mxu1 %v3475_v62  ;;  %v3530_v62 = vld [vmem:[#allocation4 + $0x540] ss:$16 sps:$4 sm:$0xff]   ;;  %v3538_v0 = vld [vmem:[#allocation4 + $0x564] ss:$16 sps:$4 sm:$0xff]  }
 0x139   :  { %2014 = vmatprep.mubr.bf16.mxu0 %v4116_v2  ;;  %v4120_v8 = vpop.f32.mrb[8].mxu0 }
 0x13a   :  { %2015 = vmatmul.mubr.bf16.vlgmr.msra.gmra.mrb[16].mxu0 %v4114_v1  ;;  %v321_v9 = vpop.f32.mrb[9].mxu0 }
 0x13b   :  { %2024 = vmatpush1.bf16.msra.mxu0 %v3470_v3  ;;  %2110 = vmatpush1.bf16.msra.mxu1 %v3473_v4  ;;  %v322_v12 = vadd.f32 %v321_v9, %v122_v5  ;;  %v323_v13 = vpop.f32.mrb[10].mxu0  ;;  %v3541_v3 = vld [vmem:[#allocation4 + $0x1ac] ss:$16 sps:$4 sm:$0xff]   ;;  %v3536_v4 = vld [vmem:[#allocation4 + $0x560] ss:$16 sps:$4 sm:$0xff]   ;;  %v117_v9 = vsub.s32 4, %v4085_v32 }
 0x13c   :  { %2025 = vmatprep.subr.bf16.mxu0 %v3478_v6  ;;  %2111 = vmatprep.subr.bf16.mxu1 %v3481_v7  ;;  %v324_v16 = vpop.f32.mrb[11].mxu0  ;;  %v3539_v5 = vld [vmem:[#allocation4 + $0x1a8] ss:$16 sps:$4 sm:$0xff]   ;;  %v3544_v6 = vld [vmem:[#allocation4 + $0x584] ss:$16 sps:$4 sm:$0xff]  }
 0x13d   :  { %v372_v17 = vmax.f32 %v322_v12, 0.0  ;;  %v3547_v7 = vld [vmem:[#allocation4 + $0x1cc] ss:$16 sps:$4 sm:$0xff]   ;;  %v3550_v12 = vld [vmem:[#allocation4 + $0x5a4] ss:$16 sps:$4 sm:$0xff]  }
 0x13e   :  { %v3553_v13 = vld [vmem:[#allocation4 + $0x1ec] ss:$16 sps:$4 sm:$0xff]   ;;  %v3548_v16 = vld [vmem:[#allocation4 + $0x5a0] ss:$16 sps:$4 sm:$0xff]  }
 0x13f   :  { %2026 = vmatpush1.bf16.msra.mxu0 %v3476_v10  ;;  %2112 = vmatpush1.bf16.msra.mxu1 %v3479_v11  ;;  %v4123_v20 = vpack.c.bf16 %v372_v17, %v372_v17  ;;  %v3542_v10 = vld [vmem:[#allocation4 + $0x580] ss:$16 sps:$4 sm:$0xff]   ;;  %v3545_v11 = vld [vmem:[#allocation4 + $0x1c8] ss:$16 sps:$4 sm:$0xff]  }
 0x140   :  { %2027 = vmatprep.subr.bf16.mxu0 %v3484_v14  ;;  %2113 = vmatprep.subr.bf16.mxu1 %v3487_v15  ;;  %v129_v14 = vsub.s32 7, %v4085_v32  ;;  %v118_v15 = vrot.slane %v4093_v34, %v117_v9  ;;  %v3551_v17 = vld [vmem:[#allocation4 + $0x1e8] ss:$16 sps:$4 sm:$0xff]  }
 0x141   :  { %2055 = vmatprep.mubr.bf16.mxu0 %v4123_v20  ;;  %v4126_v23 = vpop.f32.mrb[12].mxu0  ;;  %v3611_v9 = vld [vmem:[#allocation4 + $0x328] ss:$16 sps:$4 sm:$0xff]  }
 0x142   :  { %v4128_v24 = vpop.f32.mrb[13].mxu0 }
 0x143   :  { %2028 = vmatpush1.bf16.msra.mxu0 %v3482_v18  ;;  %2114 = vmatpush1.bf16.msra.mxu1 %v3485_v19  ;;  %v364_v27 = vpop.f32.mrb[14].mxu0  ;;  %v3556_v18 = vld [vmem:[#allocation4 + $0x5c4] ss:$16 sps:$4 sm:$0xff]   ;;  %v3559_v19 = vld [vmem:[#allocation4 + $0x20c] ss:$16 sps:$4 sm:$0xff]  }
 0x144   :  { %2029 = vmatprep.subr.bf16.mxu0 %v3490_v21  ;;  %2115 = vmatprep.subr.bf16.mxu1 %v3493_v22  ;;  %v365_v30 = vpop.f32.mrb[15].mxu0  ;;  %v130_v21 = vrot.slane %v4093_v34, %v129_v14  ;;  %v320_v22 = vadd.f32 %v4120_v8, %v118_v15  ;;  %v3562_v27 = vld [vmem:[#allocation4 + $0x5e4] ss:$16 sps:$4 sm:$0xff]   ;;  %v3625_v15 = vld [vmem:[#allocation4 + $0x36c] ss:$16 sps:$4 sm:$0xff]  }
 0x145   :  { %v3568_v8 = vld [vmem:[#allocation4 + $0x604] ss:$16 sps:$4 sm:$0xff]  }
 0x146   :  { %v371_v30 = vmax.f32 %v320_v22, 0.0  ;;  %v3622_v14 = vld [vmem:[#allocation4 + $0x724] ss:$16 sps:$4 sm:$0xff]   ;;  %v3629_v22 = vld [vmem:[#allocation4 + $0x388] ss:$16 sps:$4 sm:$0xff]  }
 0x147   :  { %2030 = vmatpush1.bf16.msra.mxu0 %v3488_v25  ;;  %2116 = vmatpush1.bf16.msra.mxu1 %v3491_v26  ;;  %v3554_v25 = vld [vmem:[#allocation4 + $0x5c0] ss:$16 sps:$4 sm:$0xff]   ;;  %v3557_v26 = vld [vmem:[#allocation4 + $0x208] ss:$16 sps:$4 sm:$0xff]  }
 0x148   :  { %2031 = vmatprep.subr.bf16.mxu0 %v3496_v28  ;;  %2117 = vmatprep.subr.bf16.mxu1 %v3499_v29  ;;  %v3565_v28 = vld [vmem:[#allocation4 + $0x22c] ss:$16 sps:$4 sm:$0xff]   ;;  %v363_v29 = vadd.f32 %v4128_v24, %v130_v21  ;;  %v3569_v24 = vld [vmem:[#allocation4 + $0x248] ss:$16 sps:$4 sm:$0xff]   ;;  %v3626_v21 = vld [vmem:[#allocation4 + $0x740] ss:$16 sps:$4 sm:$0xff]  }
 0x14b   :  { %2032 = vmatpush1.bf16.msra.mxu0 %v3494_v31  ;;  %2118 = vmatpush1.bf16.msra.mxu1 %v3497_v36  ;;  %v3560_v31 = vld [vmem:[#allocation4 + $0x5e0] ss:$16 sps:$4 sm:$0xff]   ;;  %v3563_v36 = vld [vmem:[#allocation4 + $0x228] ss:$16 sps:$4 sm:$0xff]  }
 0x14c   :  { %2033 = vmatprep.subr.bf16.mxu0 %v3502_v37  ;;  %2119 = vmatprep.subr.bf16.mxu1 %v3505_v38  ;;  %v3571_v37 = vld [vmem:[#allocation4 + $0x24c] ss:$16 sps:$4 sm:$0xff]   ;;  %v374_v38 = vmax.f32 %v363_v29, 0.0  ;;  %v3640_v29 = vld [vmem:[#allocation4 + $0x784] ss:$16 sps:$4 sm:$0xff]  }
 0x14f   :  { %2034 = vmatpush1.bf16.msra.mxu0 %v3500_v39  ;;  %2120 = vmatpush1.bf16.msra.mxu1 %v3503_v40  ;;  %v4138_v39 = vpack.c.bf16 %v371_v30, %v371_v30  ;;  %v3566_v40 = vld [vmem:[#allocation4 + $0x600] ss:$16 sps:$4 sm:$0xff]   ;;  %v3643_v30 = vld [vmem:[#allocation4 + $0x3cc] ss:$16 sps:$4 sm:$0xff]  }
 0x150   :  { %2035 = vmatprep.subr.bf16.mxu0 %v3508_v42  ;;  %2121 = vmatprep.subr.bf16.mxu1 %v3511_v43  ;;  %v3577_v42 = vld [vmem:[#allocation4 + $0x26c] ss:$16 sps:$4 sm:$0xff]   ;;  %v4140_v43 = vpack.c.bf16 %v374_v38, %v374_v38 }
 0x151   :  { %v3649_v38 = vld [vmem:[#allocation4 + $0x3ec] ss:$16 sps:$4 sm:$0xff]  }
 0x153   :  { %2036 = vmatpush1.bf16.msra.mxu0 %v3506_v45  ;;  %2122 = vmatpush1.bf16.msra.mxu1 %v3509_v46  ;;  %v3575_v45 = vld [vmem:[#allocation4 + $0x268] ss:$16 sps:$4 sm:$0xff]   ;;  %v3580_v46 = vld [vmem:[#allocation4 + $0x644] ss:$16 sps:$4 sm:$0xff]  }
 0x154   :  { %2037 = vmatprep.subr.bf16.mxu0 %v3514_v47  ;;  %2123 = vmatprep.subr.bf16.mxu1 %v3517_v48  ;;  %v3583_v47 = vld [vmem:[#allocation4 + $0x28c] ss:$16 sps:$4 sm:$0xff]   ;;  %v3578_v48 = vld [vmem:[#allocation4 + $0x640] ss:$16 sps:$4 sm:$0xff]  }
 0x157   :  { %2038 = vmatpush1.bf16.msra.mxu0 %v3512_v49  ;;  %2124 = vmatpush1.bf16.msra.mxu1 %v3515_v50  ;;  %v3581_v49 = vld [vmem:[#allocation4 + $0x288] ss:$16 sps:$4 sm:$0xff]   ;;  %v3586_v50 = vld [vmem:[#allocation4 + $0x664] ss:$16 sps:$4 sm:$0xff]  }
 0x158   :  { %2039 = vmatprep.subr.bf16.mxu0 %v3520_v51  ;;  %2125 = vmatprep.subr.bf16.mxu1 %v3523_v53  ;;  %v3589_v51 = vld [vmem:[#allocation4 + $0x2ac] ss:$16 sps:$4 sm:$0xff]   ;;  %v3584_v53 = vld [vmem:[#allocation4 + $0x660] ss:$16 sps:$4 sm:$0xff]  }
 0x15b   :  { %2040 = vmatpush1.bf16.msra.mxu0 %v3518_v54  ;;  %2126 = vmatpush1.bf16.msra.mxu1 %v3521_v55  ;;  %v3587_v54 = vld [vmem:[#allocation4 + $0x2a8] ss:$16 sps:$4 sm:$0xff]   ;;  %v3592_v55 = vld [vmem:[#allocation4 + $0x684] ss:$16 sps:$4 sm:$0xff]  }
 0x15c   :  { %2041 = vmatprep.subr.bf16.mxu0 %v3526_v56  ;;  %2127 = vmatprep.subr.bf16.mxu1 %v3529_v57  ;;  %v3595_v56 = vld [vmem:[#allocation4 + $0x2cc] ss:$16 sps:$4 sm:$0xff]   ;;  %v3590_v57 = vld [vmem:[#allocation4 + $0x680] ss:$16 sps:$4 sm:$0xff]  }
 0x15f   :  { %2042 = vmatpush1.bf16.msra.mxu0 %v3524_v58  ;;  %2128 = vmatpush1.bf16.msra.mxu1 %v3527_v59  ;;  %v3593_v58 = vld [vmem:[#allocation4 + $0x2c8] ss:$16 sps:$4 sm:$0xff]   ;;  %v3598_v59 = vld [vmem:[#allocation4 + $0x6a4] ss:$16 sps:$4 sm:$0xff]  }
 0x160   :  { %2043 = vmatprep.subr.bf16.mxu0 %v3532_v60  ;;  %2129 = vmatprep.subr.bf16.mxu1 %v3535_v61  ;;  %v3601_v60 = vld [vmem:[#allocation4 + $0x2ec] ss:$16 sps:$4 sm:$0xff]   ;;  %v3596_v61 = vld [vmem:[#allocation4 + $0x6a0] ss:$16 sps:$4 sm:$0xff]  }
 0x163   :  { %2044 = vmatpush1.bf16.msra.mxu0 %v3530_v62  ;;  %2130 = vmatpush1.bf16.msra.mxu1 %v3533_v63  ;;  %v3599_v62 = vld [vmem:[#allocation4 + $0x2e8] ss:$16 sps:$4 sm:$0xff]   ;;  %v3604_v63 = vld [vmem:[#allocation4 + $0x6c4] ss:$16 sps:$4 sm:$0xff]  }
 0x164   :  { %2045 = vmatprep.subr.bf16.mxu0 %v3538_v0  ;;  %2131 = vmatprep.subr.bf16.mxu1 %v3541_v3  ;;  %v3607_v0 = vld [vmem:[#allocation4 + $0x30c] ss:$16 sps:$4 sm:$0xff]   ;;  %v3602_v3 = vld [vmem:[#allocation4 + $0x6c0] ss:$16 sps:$4 sm:$0xff]  }
 0x167   :  { %2046 = vmatpush1.bf16.msra.mxu0 %v3536_v4  ;;  %2132 = vmatpush1.bf16.msra.mxu1 %v3539_v5  ;;  %v3605_v4 = vld [vmem:[#allocation4 + $0x308] ss:$16 sps:$4 sm:$0xff]   ;;  %v3610_v5 = vld [vmem:[#allocation4 + $0x6e4] ss:$16 sps:$4 sm:$0xff]  }
 0x168   :  { %2047 = vmatprep.subr.bf16.mxu0 %v3544_v6  ;;  %2133 = vmatprep.subr.bf16.mxu1 %v3547_v7  ;;  %v3613_v6 = vld [vmem:[#allocation4 + $0x32c] ss:$16 sps:$4 sm:$0xff]   ;;  %v3608_v7 = vld [vmem:[#allocation4 + $0x6e0] ss:$16 sps:$4 sm:$0xff]  }
 0x16b   :  { %2048 = vmatpush1.bf16.msra.mxu0 %v3542_v10  ;;  %2134 = vmatpush1.bf16.msra.mxu1 %v3545_v11  ;;  %v3616_v10 = vld [vmem:[#allocation4 + $0x704] ss:$16 sps:$4 sm:$0xff]   ;;  %v3619_v11 = vld [vmem:[#allocation4 + $0x34c] ss:$16 sps:$4 sm:$0xff]  }
 0x16c   :  { %2049 = vmatprep.subr.bf16.mxu0 %v3550_v12  ;;  %2135 = vmatprep.subr.bf16.mxu1 %v3553_v13  ;;  %v3614_v12 = vld [vmem:[#allocation4 + $0x700] ss:$16 sps:$4 sm:$0xff]   ;;  %v3617_v13 = vld [vmem:[#allocation4 + $0x348] ss:$16 sps:$4 sm:$0xff]  }
 0x16f   :  { %2050 = vmatpush1.bf16.msra.mxu0 %v3548_v16  ;;  %2136 = vmatpush1.bf16.msra.mxu1 %v3551_v17  ;;  %v3620_v16 = vld [vmem:[#allocation4 + $0x720] ss:$16 sps:$4 sm:$0xff]   ;;  %v3623_v17 = vld [vmem:[#allocation4 + $0x368] ss:$16 sps:$4 sm:$0xff]  }
 0x170   :  { %2051 = vmatprep.subr.bf16.mxu0 %v3556_v18  ;;  %2146 = vmatprep.subr.bf16.mxu1 %v3559_v19  ;;  %v3628_v18 = vld [vmem:[#allocation4 + $0x744] ss:$16 sps:$4 sm:$0xff]   ;;  %v3631_v19 = vld [vmem:[#allocation4 + $0x38c] ss:$16 sps:$4 sm:$0xff]  }
 0x172   :  { %2138 = vmatmul.mubr.bf16.vlgmr.msra.gmra.mrb[4].mxu1 %v4110_v52  ;;  %v3574_v52 = vld [vmem:[#allocation4 + $0x624] ss:$16 sps:$4 sm:$0xff]  }
 0x173   :  { %2052 = vmatpush1.bf16.msra.mxu0 %v3554_v25  ;;  %2147 = vmatpush1.bf16.msra.mxu1 %v3557_v26  ;;  %v3634_v25 = vld [vmem:[#allocation4 + $0x764] ss:$16 sps:$4 sm:$0xff]   ;;  %v3637_v26 = vld [vmem:[#allocation4 + $0x3ac] ss:$16 sps:$4 sm:$0xff]  }
 0x174   :  { %2178 = vmatprep.mubr.bf16.mxu1 %v4116_v2  ;;  %2053 = vmatprep.subr.bf16.mxu0 %v3562_v27  ;;  %v3572_v2 = vld [vmem:[#allocation4 + $0x620] ss:$16 sps:$4 sm:$0xff]  }
 0x175   :  { %2148 = vmatprep.subr.bf16.mxu1 %v3565_v28  ;;  %v3632_v27 = vld [vmem:[#allocation4 + $0x760] ss:$16 sps:$4 sm:$0xff]   ;;  %v3635_v28 = vld [vmem:[#allocation4 + $0x3a8] ss:$16 sps:$4 sm:$0xff]  }
 0x177   :  { %2054 = vmatpush1.bf16.msra.mxu0 %v3560_v31  ;;  %2149 = vmatpush1.bf16.msra.mxu1 %v3563_v36  ;;  %v125_v31 = vsub.s32 6, %v4085_v32  ;;  %v3638_v36 = vld [vmem:[#allocation4 + $0x780] ss:$16 sps:$4 sm:$0xff]   ;;  %v3863_v32 = vld [vmem:[#allocation7 + $0x38] sm:$0xff]  }
 0x178   :  { %2064 = vmatprep.subr.bf16.mxu0 %v3568_v8  ;;  %2150 = vmatprep.subr.bf16.mxu1 %v3571_v37  ;;  %v3641_v8 = vld [vmem:[#allocation4 + $0x3c8] ss:$16 sps:$4 sm:$0xff]   ;;  %v3646_v37 = vld [vmem:[#allocation4 + $0x7a4] ss:$16 sps:$4 sm:$0xff]  }
 0x17a   :  { %2056 = vmatmul.mubr.bf16.vlgmr.msra.gmra.mrb[16].mxu0 %v4138_v39 }
 0x17b   :  { %2065 = vmatpush1.bf16.msra.mxu0 %v3566_v40  ;;  %2151 = vmatpush1.bf16.msra.mxu1 %v3569_v24  ;;  %v126_v40 = vrot.slane %v4093_v34, %v125_v31  ;;  %v3644_v24 = vld [vmem:[#allocation4 + $0x7a0] ss:$16 sps:$4 sm:$0xff]   ;;  %v3689_v31 = vld [vmem:[#allocation4 + $0x568] ss:$16 sps:$4 sm:$0xff]  }
 0x17c   :  { %2066 = vmatprep.subr.bf16.mxu0 %v3574_v52  ;;  %2152 = vmatprep.subr.bf16.mxu1 %v3577_v42  ;;  %v3647_v52 = vld [vmem:[#allocation4 + $0x3e8] ss:$16 sps:$4 sm:$0xff]   ;;  %v3652_v42 = vld [vmem:[#allocation4 + $0x7c4] ss:$16 sps:$4 sm:$0xff]   ;;  %v3656_v34 = vld [vmem:[#allocation4 + $0x7e0] ss:$16 sps:$4 sm:$0xff]  }
 0x17d   :  { %2096 = vmatprep.mubr.bf16.mxu0 %v4140_v43 }
 0x17f   :  { %2067 = vmatpush1.bf16.msra.mxu0 %v3572_v2  ;;  %2153 = vmatpush1.bf16.msra.mxu1 %v3575_v45  ;;  %v3655_v2 = vld [vmem:[#allocation4 + $0x40c] ss:$16 sps:$4 sm:$0xff]   ;;  %v361_v45 = vadd.f32 %v4126_v23, %v126_v40  ;;  %v3782_v40 = vld [vmem:[#allocation6 + $0xa0] ss:$8 sps:$4 sm:$0xff]  }
 0x180   :  { %2068 = vmatprep.subr.bf16.mxu0 %v3580_v46  ;;  %2154 = vmatprep.subr.bf16.mxu1 %v3583_v47  ;;  %v3650_v46 = vld [vmem:[#allocation4 + $0x7c0] ss:$16 sps:$4 sm:$0xff]   ;;  %v3653_v47 = vld [vmem:[#allocation4 + $0x408] ss:$16 sps:$4 sm:$0xff]   ;;  %v3754_v23 = vld [vmem:[#allocation6 + $0x4] ss:$8 sps:$4 sm:$0xff]  }
 0x183   :  { %2069 = vmatpush1.bf16.msra.mxu0 %v3578_v48  ;;  %2155 = vmatpush1.bf16.msra.mxu1 %v3581_v49  ;;  %v3658_v48 = vld [vmem:[#allocation4 + $0x7e4] ss:$16 sps:$4 sm:$0xff]   ;;  %v3661_v49 = vld [vmem:[#allocation4 + $0x42c] ss:$16 sps:$4 sm:$0xff]  }
 0x184   :  { %2070 = vmatprep.subr.bf16.mxu0 %v3586_v50  ;;  %2156 = vmatprep.subr.bf16.mxu1 %v3589_v51  ;;  %v373_v50 = vmax.f32 %v361_v45, 0.0  ;;  %v3659_v51 = vld [vmem:[#allocation4 + $0x428] ss:$16 sps:$4 sm:$0xff]   ;;  %v3700_v45 = vld [vmem:[#allocation4 + $0x5cc] ss:$16 sps:$4 sm:$0xff]  }
 0x187   :  { %2071 = vmatpush1.bf16.msra.mxu0 %v3584_v53  ;;  %2157 = vmatpush1.bf16.msra.mxu1 %v3587_v54  ;;  %v3664_v53 = vld [vmem:[#allocation4 + $0x44c] ss:$16 sps:$4 sm:$0xff]   ;;  %v4149_v54 = vpack.c.bf16 %v373_v50, %v373_v50 }
 0x188   :  { %2072 = vmatprep.subr.bf16.mxu0 %v3592_v55  ;;  %2158 = vmatprep.subr.bf16.mxu1 %v3595_v56  ;;  %v3662_v55 = vld [vmem:[#allocation4 + $0x448] ss:$16 sps:$4 sm:$0xff]   ;;  %v3793_v50 = vld [vmem:[#allocation6 + $0xd4] ss:$8 sps:$4 sm:$0xff]  }
 0x189   :  { %v3752_v56 = vld [vmem:[#allocation6] ss:$8 sps:$4 sm:$0xff]  }
 0x18b   :  { %2073 = vmatpush1.bf16.msra.mxu0 %v3590_v57  ;;  %2159 = vmatpush1.bf16.msra.mxu1 %v3593_v58  ;;  %v3667_v57 = vld [vmem:[#allocation4 + $0x46c] ss:$16 sps:$4 sm:$0xff]   ;;  %v3665_v58 = vld [vmem:[#allocation4 + $0x468] ss:$16 sps:$4 sm:$0xff]  }
 0x18c   :  { %2074 = vmatprep.subr.bf16.mxu0 %v3598_v59  ;;  %2160 = vmatprep.subr.bf16.mxu1 %v3601_v60  ;;  %v3670_v59 = vld [vmem:[#allocation4 + $0x48c] ss:$16 sps:$4 sm:$0xff]  }
 0x18d   :  { %v3760_v60 = vld [vmem:[#allocation6 + $0x24] ss:$8 sps:$4 sm:$0xff]  }
 0x18f   :  { %2075 = vmatpush1.bf16.msra.mxu0 %v3596_v61  ;;  %2161 = vmatpush1.bf16.msra.mxu1 %v3599_v62  ;;  %v3668_v61 = vld [vmem:[#allocation4 + $0x488] ss:$16 sps:$4 sm:$0xff]  }
 0x190   :  { %2076 = vmatprep.subr.bf16.mxu0 %v3604_v63  ;;  %2162 = vmatprep.subr.bf16.mxu1 %v3607_v0  ;;  %v3758_v62 = vld [vmem:[#allocation6 + $0x20] ss:$8 sps:$4 sm:$0xff]   ;;  %v3673_v63 = vld [vmem:[#allocation4 + $0x4ac] ss:$16 sps:$4 sm:$0xff]  }
 0x191   :  { %v3763_v0 = vld [vmem:[#allocation6 + $0x34] ss:$8 sps:$4 sm:$0xff]  }
 0x193   :  { %2077 = vmatpush1.bf16.msra.mxu0 %v3602_v3  ;;  %2163 = vmatpush1.bf16.msra.mxu1 %v3605_v4  ;;  %v3671_v3 = vld [vmem:[#allocation4 + $0x4a8] ss:$16 sps:$4 sm:$0xff]  }
 0x194   :  { %2078 = vmatprep.subr.bf16.mxu0 %v3610_v5  ;;  %2164 = vmatprep.subr.bf16.mxu1 %v3613_v6  ;;  %v3761_v4 = vld [vmem:[#allocation6 + $0x30] ss:$8 sps:$4 sm:$0xff]   ;;  %v3676_v5 = vld [vmem:[#allocation4 + $0x4cc] ss:$16 sps:$4 sm:$0xff]  }
 0x195   :  { %v3766_v6 = vld [vmem:[#allocation6 + $0x44] ss:$8 sps:$4 sm:$0xff]  }
 0x197   :  { %2079 = vmatpush1.bf16.msra.mxu0 %v3608_v7  ;;  %2165 = vmatpush1.bf16.msra.mxu1 %v3611_v9  ;;  %v3674_v7 = vld [vmem:[#allocation4 + $0x4c8] ss:$16 sps:$4 sm:$0xff]  }
 0x198   :  { %2080 = vmatprep.subr.bf16.mxu0 %v3616_v10  ;;  %2166 = vmatprep.subr.bf16.mxu1 %v3619_v11  ;;  %v3764_v9 = vld [vmem:[#allocation6 + $0x40] ss:$8 sps:$4 sm:$0xff]   ;;  %v3679_v10 = vld [vmem:[#allocation4 + $0x4ec] ss:$16 sps:$4 sm:$0xff]  }
 0x199   :  { %v3769_v11 = vld [vmem:[#allocation6 + $0x54] ss:$8 sps:$4 sm:$0xff]  }
 0x19b   :  { %2081 = vmatpush1.bf16.msra.mxu0 %v3614_v12  ;;  %2167 = vmatpush1.bf16.msra.mxu1 %v3617_v13  ;;  %v3677_v12 = vld [vmem:[#allocation4 + $0x4e8] ss:$16 sps:$4 sm:$0xff]  }
 0x19c   :  { %2082 = vmatprep.subr.bf16.mxu0 %v3622_v14  ;;  %2168 = vmatprep.subr.bf16.mxu1 %v3625_v15  ;;  %v3767_v13 = vld [vmem:[#allocation6 + $0x50] ss:$8 sps:$4 sm:$0xff]   ;;  %v3682_v14 = vld [vmem:[#allocation4 + $0x50c] ss:$16 sps:$4 sm:$0xff]  }
 0x19d   :  { %v3772_v15 = vld [vmem:[#allocation6 + $0x64] ss:$8 sps:$4 sm:$0xff]  }
 0x19f   :  { %2083 = vmatpush1.bf16.msra.mxu0 %v3620_v16  ;;  %2169 = vmatpush1.bf16.msra.mxu1 %v3623_v17  ;;  %v3680_v16 = vld [vmem:[#allocation4 + $0x508] ss:$16 sps:$4 sm:$0xff]  }
 0x1a0   :  { %2084 = vmatprep.subr.bf16.mxu0 %v3628_v18  ;;  %2170 = vmatprep.subr.bf16.mxu1 %v3631_v19  ;;  %v3770_v17 = vld [vmem:[#allocation6 + $0x60] ss:$8 sps:$4 sm:$0xff]   ;;  %v3685_v18 = vld [vmem:[#allocation4 + $0x52c] ss:$16 sps:$4 sm:$0xff]  }
 0x1a1   :  { %v3775_v19 = vld [vmem:[#allocation6 + $0x74] ss:$8 sps:$4 sm:$0xff]  }
 0x1a3   :  { %2085 = vmatpush1.bf16.msra.mxu0 %v3626_v21  ;;  %2171 = vmatpush1.bf16.msra.mxu1 %v3629_v22  ;;  %v3683_v21 = vld [vmem:[#allocation4 + $0x528] ss:$16 sps:$4 sm:$0xff]  }
 0x1a4   :  { %2086 = vmatprep.subr.bf16.mxu0 %v3634_v25  ;;  %2172 = vmatprep.subr.bf16.mxu1 %v3637_v26  ;;  %v3773_v22 = vld [vmem:[#allocation6 + $0x70] ss:$8 sps:$4 sm:$0xff]   ;;  %v3688_v25 = vld [vmem:[#allocation4 + $0x54c] ss:$16 sps:$4 sm:$0xff]  }
 0x1a5   :  { %v3778_v26 = vld [vmem:[#allocation6 + $0x84] ss:$8 sps:$4 sm:$0xff]  }
 0x1a7   :  { %2087 = vmatpush1.bf16.msra.mxu0 %v3632_v27  ;;  %2173 = vmatpush1.bf16.msra.mxu1 %v3635_v28  ;;  %v3686_v27 = vld [vmem:[#allocation4 + $0x548] ss:$16 sps:$4 sm:$0xff]  }
 0x1a8   :  { %2088 = vmatprep.subr.bf16.mxu0 %v3640_v29  ;;  %2174 = vmatprep.subr.bf16.mxu1 %v3643_v30  ;;  %v3776_v28 = vld [vmem:[#allocation6 + $0x80] ss:$8 sps:$4 sm:$0xff]   ;;  %v3691_v29 = vld [vmem:[#allocation4 + $0x56c] ss:$16 sps:$4 sm:$0xff]  }
 0x1a9   :  { %v3781_v30 = vld [vmem:[#allocation6 + $0x94] ss:$8 sps:$4 sm:$0xff]  }
 0x1ab   :  { %2089 = vmatpush1.bf16.msra.mxu0 %v3638_v36  ;;  %2175 = vmatpush1.bf16.msra.mxu1 %v3641_v8  ;;  %v3779_v36 = vld [vmem:[#allocation6 + $0x90] ss:$8 sps:$4 sm:$0xff]   ;;  %v3694_v8 = vld [vmem:[#allocation4 + $0x58c] ss:$16 sps:$4 sm:$0xff]  }
 0x1ac   :  { %2090 = vmatprep.subr.bf16.mxu0 %v3646_v37  ;;  %2176 = vmatprep.subr.bf16.mxu1 %v3649_v38  ;;  %v3784_v37 = vld [vmem:[#allocation6 + $0xa4] ss:$8 sps:$4 sm:$0xff]   ;;  %v3692_v38 = vld [vmem:[#allocation4 + $0x588] ss:$16 sps:$4 sm:$0xff]  }
 0x1af   :  { %2091 = vmatpush1.bf16.msra.mxu0 %v3644_v24  ;;  %2177 = vmatpush1.bf16.msra.mxu1 %v3647_v52  ;;  %v3697_v24 = vld [vmem:[#allocation4 + $0x5ac] ss:$16 sps:$4 sm:$0xff]  }
 0x1b0   :  { %2092 = vmatprep.subr.bf16.mxu0 %v3652_v42  ;;  %2187 = vmatprep.subr.bf16.mxu1 %v3655_v2  ;;  %v3787_v52 = vld [vmem:[#allocation6 + $0xb4] ss:$8 sps:$4 sm:$0xff]   ;;  %v3695_v42 = vld [vmem:[#allocation4 + $0x5a8] ss:$16 sps:$4 sm:$0xff]  }
 0x1b1   :  { %v3785_v2 = vld [vmem:[#allocation6 + $0xb0] ss:$8 sps:$4 sm:$0xff]  }
 0x1b2   :  { %2179 = vmatmul.mubr.bf16.vlgmr.msra.gmra.mrb[4].mxu1 %v4114_v1  ;;  %v3757_v1 = vld [vmem:[#allocation6 + $0x14] ss:$8 sps:$4 sm:$0xff]  }
 0x1b3   :  { %2093 = vmatpush1.bf16.msra.mxu0 %v3650_v46  ;;  %2188 = vmatpush1.bf16.msra.mxu1 %v3653_v47  ;;  %v3790_v46 = vld [vmem:[#allocation6 + $0xc4] ss:$8 sps:$4 sm:$0xff]   ;;  %v3698_v47 = vld [vmem:[#allocation4 + $0x5c8] ss:$16 sps:$4 sm:$0xff]  }
 0x1b4   :  { %2219 = vmatprep.mubr.bf16.mxu1 %v4123_v20  ;;  %2094 = vmatprep.subr.bf16.mxu0 %v3658_v48  ;;  %v3755_v20 = vld [vmem:[#allocation6 + $0x10] ss:$8 sps:$4 sm:$0xff]   ;;  %v3788_v48 = vld [vmem:[#allocation6 + $0xc0] ss:$8 sps:$4 sm:$0xff]  }
 0x1b5   :  { %2189 = vmatprep.subr.bf16.mxu1 %v3661_v49  ;;  %v3703_v49 = vld [vmem:[#allocation4 + $0x5ec] ss:$16 sps:$4 sm:$0xff]  }
 0x1b7   :  { %2095 = vmatpush1.bf16.msra.mxu0 %v3656_v34  ;;  %2190 = vmatpush1.bf16.msra.mxu1 %v3659_v51  ;;  %v3701_v34 = vld [vmem:[#allocation4 + $0x5e8] ss:$16 sps:$4 sm:$0xff]  }
 0x1b8   :  { %2191 = vmatprep.subr.bf16.mxu1 %v3664_v53  ;;  %2673 = vmatprep.subr.bf16.mxu0 %v3754_v23  ;;  %v3791_v51 = vld [vmem:[#allocation6 + $0xd0] ss:$8 sps:$4 sm:$0xff]   ;;  %v3706_v53 = vld [vmem:[#allocation4 + $0x60c] ss:$16 sps:$4 sm:$0xff]  }
 0x1b9   :  { %v3704_v23 = vld [vmem:[#allocation4 + $0x608] ss:$16 sps:$4 sm:$0xff]  }
 0x1ba   :  { %2097 = vmatmul.mubr.bf16.vlgmr.msra.gmra.mrb[16].mxu0 %v4149_v54 }
 0x1bb   :  { %2192 = vmatpush1.bf16.msra.mxu1 %v3662_v55  ;;  %2674 = vmatpush1.bf16.msra.mxu0 %v3752_v56  ;;  %v3709_v55 = vld [vmem:[#allocation4 + $0x62c] ss:$16 sps:$4 sm:$0xff]   ;;  %v3707_v56 = vld [vmem:[#allocation4 + $0x628] ss:$16 sps:$4 sm:$0xff]  }
 0x1bc   :  { %2193 = vmatprep.subr.bf16.mxu1 %v3667_v57  ;;  %2675 = vmatprep.subr.bf16.mxu0 %v3757_v1  ;;  %v3712_v57 = vld [vmem:[#allocation4 + $0x64c] ss:$16 sps:$4 sm:$0xff]   ;;  %v3710_v1 = vld [vmem:[#allocation4 + $0x648] ss:$16 sps:$4 sm:$0xff]  }
 0x1bf   :  { %2194 = vmatpush1.bf16.msra.mxu1 %v3665_v58  ;;  %2676 = vmatpush1.bf16.msra.mxu0 %v3755_v20  ;;  %v3715_v58 = vld [vmem:[#allocation4 + $0x66c] ss:$16 sps:$4 sm:$0xff]   ;;  %v3713_v20 = vld [vmem:[#allocation4 + $0x668] ss:$16 sps:$4 sm:$0xff]  }
 0x1c0   :  { %2195 = vmatprep.subr.bf16.mxu1 %v3670_v59  ;;  %2677 = vmatprep.subr.bf16.mxu0 %v3760_v60  ;;  %v3718_v59 = vld [vmem:[#allocation4 + $0x68c] ss:$16 sps:$4 sm:$0xff]   ;;  %v3716_v60 = vld [vmem:[#allocation4 + $0x688] ss:$16 sps:$4 sm:$0xff]  }
 0x1c3   :  { %2196 = vmatpush1.bf16.msra.mxu1 %v3668_v61  ;;  %2678 = vmatpush1.bf16.msra.mxu0 %v3758_v62  ;;  %v3721_v61 = vld [vmem:[#allocation4 + $0x6ac] ss:$16 sps:$4 sm:$0xff]  }
 0x1c4   :  { %2197 = vmatprep.subr.bf16.mxu1 %v3673_v63  ;;  %2679 = vmatprep.subr.bf16.mxu0 %v3763_v0  ;;  %v3724_v62 = vld [vmem:[#allocation4 + $0x6cc] ss:$16 sps:$4 sm:$0xff]  }
 0x1c7   :  { %2198 = vmatpush1.bf16.msra.mxu1 %v3671_v3  ;;  %2680 = vmatpush1.bf16.msra.mxu0 %v3761_v4  ;;  %v3722_v3 = vld [vmem:[#allocation4 + $0x6c8] ss:$16 sps:$4 sm:$0xff]  }
 0x1c8   :  { %2199 = vmatprep.subr.bf16.mxu1 %v3676_v5  ;;  %2681 = vmatprep.subr.bf16.mxu0 %v3766_v6  ;;  %v3727_v5 = vld [vmem:[#allocation4 + $0x6ec] ss:$16 sps:$4 sm:$0xff]   ;;  %v3725_v6 = vld [vmem:[#allocation4 + $0x6e8] ss:$16 sps:$4 sm:$0xff]  }
 0x1cb   :  { %2200 = vmatpush1.bf16.msra.mxu1 %v3674_v7  ;;  %2682 = vmatpush1.bf16.msra.mxu0 %v3764_v9  ;;  %v3730_v7 = vld [vmem:[#allocation4 + $0x70c] ss:$16 sps:$4 sm:$0xff]  }
 0x1cc   :  { %2201 = vmatprep.subr.bf16.mxu1 %v3679_v10  ;;  %2683 = vmatprep.subr.bf16.mxu0 %v3769_v11  ;;  %v3796_v9 = vld [vmem:[#allocation6 + $0xe4] ss:$8 sps:$4 sm:$0xff]   ;;  %v3794_v10 = vld [vmem:[#allocation6 + $0xe0] ss:$8 sps:$4 sm:$0xff]  }
 0x1cd   :  { %v3728_v11 = vld [vmem:[#allocation4 + $0x708] ss:$16 sps:$4 sm:$0xff]  }
 0x1cf   :  { %2202 = vmatpush1.bf16.msra.mxu1 %v3677_v12  ;;  %2684 = vmatpush1.bf16.msra.mxu0 %v3767_v13  ;;  %v3733_v12 = vld [vmem:[#allocation4 + $0x72c] ss:$16 sps:$4 sm:$0xff]  }
 0x1d0   :  { %2203 = vmatprep.subr.bf16.mxu1 %v3682_v14  ;;  %2685 = vmatprep.subr.bf16.mxu0 %v3772_v15  ;;  %v3799_v13 = vld [vmem:[#allocation6 + $0xf4] ss:$8 sps:$4 sm:$0xff]   ;;  %v3797_v14 = vld [vmem:[#allocation6 + $0xf0] ss:$8 sps:$4 sm:$0xff]  }
 0x1d1   :  { %v3731_v15 = vld [vmem:[#allocation4 + $0x728] ss:$16 sps:$4 sm:$0xff]  }
 0x1d3   :  { %2204 = vmatpush1.bf16.msra.mxu1 %v3680_v16  ;;  %2686 = vmatpush1.bf16.msra.mxu0 %v3770_v17  ;;  %v3736_v16 = vld [vmem:[#allocation4 + $0x74c] ss:$16 sps:$4 sm:$0xff]  }
 0x1d4   :  { %2205 = vmatprep.subr.bf16.mxu1 %v3685_v18  ;;  %2687 = vmatprep.subr.bf16.mxu0 %v3775_v19  ;;  %v3802_v17 = vld [vmem:[#allocation6 + $0x104] ss:$8 sps:$4 sm:$0xff]   ;;  %v3734_v18 = vld [vmem:[#allocation4 + $0x748] ss:$16 sps:$4 sm:$0xff]  }
 0x1d5   :  { %v3739_v19 = vld [vmem:[#allocation4 + $0x76c] ss:$16 sps:$4 sm:$0xff]  }
 0x1d7   :  { %2206 = vmatpush1.bf16.msra.mxu1 %v3683_v21  ;;  %2688 = vmatpush1.bf16.msra.mxu0 %v3773_v22  ;;  %v3737_v21 = vld [vmem:[#allocation4 + $0x768] ss:$16 sps:$4 sm:$0xff]   ;;  %v3742_v22 = vld [vmem:[#allocation4 + $0x78c] ss:$16 sps:$4 sm:$0xff]  }
 0x1d8   :  { %2207 = vmatprep.subr.bf16.mxu1 %v3688_v25  ;;  %2689 = vmatprep.subr.bf16.mxu0 %v3778_v26  ;;  %v3740_v25 = vld [vmem:[#allocation4 + $0x788] ss:$16 sps:$4 sm:$0xff]   ;;  %v3745_v26 = vld [vmem:[#allocation4 + $0x7ac] ss:$16 sps:$4 sm:$0xff]  }
 0x1db   :  { %2208 = vmatpush1.bf16.msra.mxu1 %v3686_v27  ;;  %2690 = vmatpush1.bf16.msra.mxu0 %v3776_v28  ;;  %v3743_v27 = vld [vmem:[#allocation4 + $0x7a8] ss:$16 sps:$4 sm:$0xff]   ;;  %v3748_v28 = vld [vmem:[#allocation4 + $0x7cc] ss:$16 sps:$4 sm:$0xff]  }
 0x1dc   :  { %2209 = vmatprep.subr.bf16.mxu1 %v3691_v29  ;;  %2691 = vmatprep.subr.bf16.mxu0 %v3781_v30  ;;  %v3746_v29 = vld [vmem:[#allocation4 + $0x7c8] ss:$16 sps:$4 sm:$0xff]   ;;  %v3751_v30 = vld [vmem:[#allocation4 + $0x7ec] ss:$16 sps:$4 sm:$0xff]  }
 0x1df   :  { %2210 = vmatpush1.bf16.msra.mxu1 %v3689_v31  ;;  %2692 = vmatpush1.bf16.msra.mxu0 %v3779_v36  ;;  %v3749_v31 = vld [vmem:[#allocation4 + $0x7e8] ss:$16 sps:$4 sm:$0xff]   ;;  %v4158_v36 = vld [vmem:[%s4185_s4] sm:$0xf] }
 0x1e0   :  { %2211 = vmatprep.subr.bf16.mxu1 %v3694_v8  ;;  %2693 = vmatprep.subr.bf16.mxu0 %v3784_v37  ;;  %v644_v8 = vrot.slane %v4158_v36, %v4088_v33  ;;  %v648_v37 = vrot.slane %v4158_v36, %v4096_v35 }
 0x1e3   :  { %2212 = vmatpush1.bf16.msra.mxu1 %v3692_v38  ;;  %2694 = vmatpush1.bf16.msra.mxu0 %v3782_v40 }
 0x1e4   :  { %2213 = vmatprep.subr.bf16.mxu1 %v3697_v24  ;;  %2695 = vmatprep.subr.bf16.mxu0 %v3787_v52 }
 0x1e7   :  { %2214 = vmatpush1.bf16.msra.mxu1 %v3695_v42  ;;  %2696 = vmatpush1.bf16.msra.mxu0 %v3785_v2  ;;  %v3848_v2 = vld [vmem:[#allocation7 + $0x40] sm:$0xff]  }
 0x1e8   :  { %2215 = vmatprep.subr.bf16.mxu1 %v3700_v45  ;;  %2697 = vmatprep.subr.bf16.mxu0 %v3790_v46  ;;  %v3849_v45 = vld [vmem:[#allocation7] sm:$0xff]   ;;  %v3850_v46 = vld [vmem:[#allocation7 + $0x48] sm:$0xff]  }
 0x1eb   :  { %2216 = vmatpush1.bf16.msra.mxu1 %v3698_v47  ;;  %2698 = vmatpush1.bf16.msra.mxu0 %v3788_v48 }
 0x1ec   :  { %2217 = vmatprep.subr.bf16.mxu1 %v3703_v49  ;;  %2699 = vmatprep.subr.bf16.mxu0 %v3793_v50 }
 0x1ef   :  { %2218 = vmatpush1.bf16.msra.mxu1 %v3701_v34  ;;  %2700 = vmatpush1.bf16.msra.mxu0 %v3791_v51  ;;  %v3851_v34 = vld [vmem:[#allocation7 + $0x8] sm:$0xff]   ;;  %v3852_v51 = vld [vmem:[#allocation7 + $0x50] sm:$0xff]  }
 0x1f0   :  { %2228 = vmatprep.subr.bf16.mxu1 %v3706_v53  ;;  %2701 = vmatprep.subr.bf16.mxu0 %v3796_v9  ;;  %v3818_v9 = vld [vmem:[#allocation6 + $0x160] ss:$8 sps:$4 sm:$0xff]  }
 0x1f2   :  { %2220 = vmatmul.mubr.bf16.vlgmr.msra.gmra.mrb[4].mxu1 %v4138_v39  ;;  %v3719_v39 = vld [vmem:[#allocation4 + $0x6a8] ss:$16 sps:$4 sm:$0xff]  }
 0x1f3   :  { %2229 = vmatpush1.bf16.msra.mxu1 %v3704_v23  ;;  %2260 = vmatprep.mubr.bf16.mxu1 %v4140_v43  ;;  %v3800_v23 = vld [vmem:[#allocation6 + $0x100] ss:$8 sps:$4 sm:$0xff]  }
 0x1f4   :  { %2230 = vmatprep.subr.bf16.mxu1 %v3709_v55  ;;  %2702 = vmatpush1.bf16.msra.mxu0 %v3794_v10  ;;  %v3823_v10 = vld [vmem:[#allocation6 + $0x174] ss:$8 sps:$4 sm:$0xff]  }
 0x1f5   :  { %2703 = vmatprep.subr.bf16.mxu0 %v3799_v13  ;;  %v3824_v13 = vld [vmem:[#allocation6 + $0x180] ss:$8 sps:$4 sm:$0xff]  }
 0x1f7   :  { %2231 = vmatpush1.bf16.msra.mxu1 %v3707_v56  ;;  %v3805_v56 = vld [vmem:[#allocation6 + $0x114] ss:$8 sps:$4 sm:$0xff]  }
 0x1f8   :  { %2232 = vmatprep.subr.bf16.mxu1 %v3712_v57  ;;  %2704 = vmatpush1.bf16.msra.mxu0 %v3797_v14  ;;  %v3853_v57 = vld [vmem:[#allocation7 + $0x10] sm:$0xff]  }
 0x1f9   :  { %2714 = vmatprep.subr.bf16.mxu0 %v3802_v17  ;;  %v3829_v14 = vld [vmem:[#allocation6 + $0x194] ss:$8 sps:$4 sm:$0xff]   ;;  %v3830_v17 = vld [vmem:[#allocation6 + $0x1a0] ss:$8 sps:$4 sm:$0xff]  }
 0x1fb   :  { %2233 = vmatpush1.bf16.msra.mxu1 %v3710_v1  ;;  %v3854_v1 = vld [vmem:[#allocation7 + $0x58] sm:$0xff]  }
 0x1fc   :  { %2234 = vmatprep.subr.bf16.mxu1 %v3715_v58  ;;  %v3803_v58 = vld [vmem:[#allocation6 + $0x110] ss:$8 sps:$4 sm:$0xff]  }
 0x1ff   :  { %2235 = vmatpush1.bf16.msra.mxu1 %v3713_v20  ;;  %v3808_v20 = vld [vmem:[#allocation6 + $0x124] ss:$8 sps:$4 sm:$0xff]  }
 0x200   :  { %2236 = vmatprep.subr.bf16.mxu1 %v3718_v59  ;;  %v3855_v59 = vld [vmem:[#allocation7 + $0x18] sm:$0xff]  }
 0x203   :  { %2237 = vmatpush1.bf16.msra.mxu1 %v3716_v60  ;;  %v3856_v60 = vld [vmem:[#allocation7 + $0x60] sm:$0xff]  }
 0x204   :  { %2238 = vmatprep.subr.bf16.mxu1 %v3721_v61  ;;  %v3806_v61 = vld [vmem:[#allocation6 + $0x120] ss:$8 sps:$4 sm:$0xff]  }
 0x205   :  { %v1975_v43 = vpop.f32.mrb[0].mxu1 }
 0x206   :  { %v1977_v63 = vpop.f32.mrb[1].mxu1  ;;  %v1976_v38 = vadd.f32 %v1975_v43, %v644_v8  ;;  %v3858_v43 = vld [vmem:[#allocation7 + $0x68] sm:$0xff]   ;;  %v656_v8 = vrot.slane %v4158_v36, %v113_v44  ;;  %v2341_v44 = vld [vmem:[%s4187_s6] sm:$0x3] }
 0x207   :  { %2239 = vmatpush1.bf16.msra.mxu1 %v3719_v39  ;;  %v1979_v0 = vpop.f32.mrb[2].mxu1  ;;  %v1978_v40 = vadd.f32 %v1977_v63, %v648_v37  ;;  %v3811_v39 = vld [vmem:[#allocation6 + $0x134] ss:$8 sps:$4 sm:$0xff]   ;;  %v3809_v63 = vld [vmem:[#allocation6 + $0x130] ss:$8 sps:$4 sm:$0xff]  }
 0x208   :  { %v1980_v4 = vpop.f32.mrb[3].mxu1  ;;  %2240 = vmatprep.subr.bf16.mxu1 %v3724_v62  ;;  %v3857_v62 = vld [vmem:[#allocation7 + $0x20] sm:$0xff]  }
 0x209   :  { %v3814_v0 = vld [vmem:[#allocation6 + $0x144] ss:$8 sps:$4 sm:$0xff]   ;;  %v3812_v4 = vld [vmem:[#allocation6 + $0x140] ss:$8 sps:$4 sm:$0xff]  }
 0x20b   :  { %2241 = vmatpush1.bf16.msra.mxu1 %v3722_v3  ;;  %v3859_v3 = vld [vmem:[#allocation7 + $0x28] sm:$0xff]  }
 0x20c   :  { %2242 = vmatprep.subr.bf16.mxu1 %v3727_v5  ;;  %v3817_v5 = vld [vmem:[#allocation6 + $0x154] ss:$8 sps:$4 sm:$0xff]  }
 0x20f   :  { %2243 = vmatpush1.bf16.msra.mxu1 %v3725_v6  ;;  %v3815_v6 = vld [vmem:[#allocation6 + $0x150] ss:$8 sps:$4 sm:$0xff]  }
 0x210   :  { %2244 = vmatprep.subr.bf16.mxu1 %v3730_v7  ;;  %v3820_v7 = vld [vmem:[#allocation6 + $0x164] ss:$8 sps:$4 sm:$0xff]  }
 0x213   :  { %2245 = vmatpush1.bf16.msra.mxu1 %v3728_v11  ;;  %v3821_v11 = vld [vmem:[#allocation6 + $0x170] ss:$8 sps:$4 sm:$0xff]  }
 0x214   :  { %2246 = vmatprep.subr.bf16.mxu1 %v3733_v12  ;;  %v3826_v12 = vld [vmem:[#allocation6 + $0x184] ss:$8 sps:$4 sm:$0xff]  }
 0x217   :  { %2247 = vmatpush1.bf16.msra.mxu1 %v3731_v15  ;;  %v3827_v15 = vld [vmem:[#allocation6 + $0x190] ss:$8 sps:$4 sm:$0xff]  }
 0x218   :  { %2248 = vmatprep.subr.bf16.mxu1 %v3736_v16  ;;  %v3832_v16 = vld [vmem:[#allocation6 + $0x1a4] ss:$8 sps:$4 sm:$0xff]  }
 0x21b   :  { %2249 = vmatpush1.bf16.msra.mxu1 %v3734_v18  ;;  %v3835_v18 = vld [vmem:[#allocation6 + $0x1b4] ss:$8 sps:$4 sm:$0xff]  }
 0x21c   :  { %2250 = vmatprep.subr.bf16.mxu1 %v3739_v19  ;;  %v3833_v19 = vld [vmem:[#allocation6 + $0x1b0] ss:$8 sps:$4 sm:$0xff]  }
 0x21f   :  { %2251 = vmatpush1.bf16.msra.mxu1 %v3737_v21  ;;  %v3838_v21 = vld [vmem:[#allocation6 + $0x1c4] ss:$8 sps:$4 sm:$0xff]  }
 0x220   :  { %2252 = vmatprep.subr.bf16.mxu1 %v3742_v22  ;;  %v3836_v22 = vld [vmem:[#allocation6 + $0x1c0] ss:$8 sps:$4 sm:$0xff]  }
 0x223   :  { %2253 = vmatpush1.bf16.msra.mxu1 %v3740_v25  ;;  %v3841_v25 = vld [vmem:[#allocation6 + $0x1d4] ss:$8 sps:$4 sm:$0xff]  }
 0x224   :  { %2254 = vmatprep.subr.bf16.mxu1 %v3745_v26  ;;  %v3839_v26 = vld [vmem:[#allocation6 + $0x1d0] ss:$8 sps:$4 sm:$0xff]  }
 0x227   :  { %2255 = vmatpush1.bf16.msra.mxu1 %v3743_v27  ;;  %v3844_v27 = vld [vmem:[#allocation6 + $0x1e4] ss:$8 sps:$4 sm:$0xff]  }
 0x228   :  { %2256 = vmatprep.subr.bf16.mxu1 %v3748_v28  ;;  %v3842_v28 = vld [vmem:[#allocation6 + $0x1e0] ss:$8 sps:$4 sm:$0xff]  }
 0x22b   :  { %2257 = vmatpush1.bf16.msra.mxu1 %v3746_v29  ;;  %v3847_v29 = vld [vmem:[#allocation6 + $0x1f4] ss:$8 sps:$4 sm:$0xff]  }
 0x22c   :  { %2258 = vmatprep.subr.bf16.mxu1 %v3751_v30  ;;  %v3845_v30 = vld [vmem:[#allocation6 + $0x1f0] ss:$8 sps:$4 sm:$0xff]  }
 0x22f   :  { %2259 = vmatpush1.bf16.msra.mxu1 %v3749_v31  ;;  %v652_v31 = vrot.slane %v4158_v36, %v109_v41  ;;  %v3862_v41 = vld [vmem:[#allocation7 + $0x78] sm:$0xff]   ;;  %v2346_v36 = vrot.slane %v2341_v44, %v4088_v33  ;;  %v3283_v33 = vld [vmem:[%s4189_s8] ss:$0 sm:$0xff] }
 0x230   :  { %3300 = vmatprep.subr.bf16.mxu1 %v3848_v2 }
 0x232   :  { %2261 = vmatmul.mubr.bf16.vlgmr.msra.gmra.mrb[4].mxu1 %v4149_v54 }
 0x233   :  { %3301 = vmatpush3.bf16.msra.mxu1 %v3849_v45 }
 0x234   :  { %3302 = vmatprep.subr.bf16.mxu1 %v3850_v46 }
 0x237   :  { %3303 = vmatpush3.bf16.msra.mxu1 %v3851_v34 }
 0x238   :  { %3304 = vmatprep.subr.bf16.mxu1 %v3852_v51 }
 0x23b   :  { %3305 = vmatpush3.bf16.msra.mxu1 %v3853_v57 }
 0x23c   :  { %3306 = vmatprep.subr.bf16.mxu1 %v3854_v1 }
 0x23f   :  { %3307 = vmatpush3.bf16.msra.mxu1 %v3855_v59 }
 0x240   :  { %3308 = vmatprep.subr.bf16.mxu1 %v3856_v60 }
 0x243   :  { %3309 = vmatpush3.bf16.msra.mxu1 %v3857_v62 }
 0x244   :  { %3310 = vmatprep.subr.bf16.mxu1 %v3858_v43 }
 0x247   :  { %3311 = vmatpush3.bf16.msra.mxu1 %v3859_v3 }
 0x28d   :  { %v2098_v24 = vpop.f32.mrb[16].mxu0 }
 0x28e   :  { %v3323_v52 = vadd.f32 %v2098_v24, %v1976_v38  ;;  %v2100_v42 = vpop.f32.mrb[17].mxu0 }
 0x28f   :  { %v3325_v54 = vadd.f32 %v2100_v42, %v1978_v40  ;;  %v2102_v47 = vpop.f32.mrb[18].mxu0 }
 0x290   :  { %v2269_v48 = vmax.f32 %v3323_v52, 0.0  ;;  %v2103_v49 = vpop.f32.mrb[19].mxu0  ;;  %v3860_v47 = vld [vmem:[#allocation7 + $0x70] sm:$0xff]  }
 0x291   :  { %v2270_v50 = vmax.f32 %v3325_v54, 0.0  ;;  %3312 = vmatprep.subr.bf16.mxu1 %v3860_v47  ;;  %v2350_v49 = vrot.slane %v2341_v44, %v4096_v35 }
 0x292   :  { %v2273_v55 = vpack.c.bf16 %v2269_v48, %v2269_v48  ;;  %v3861_v48 = vld [vmem:[#allocation7 + $0x30] sm:$0xff]  }
 0x293   :  { %v2274_v53 = vpack.c.bf16 %v2270_v50, %v2270_v50  ;;  %3313 = vmatpush3.bf16.msra.mxu1 %v3861_v48 }
 0x294   :  { %3314 = vmatprep.subr.bf16.mxu1 %v3862_v41 }
 0x295   :  { %2705 = vmatprep.mubr.bf16.mxu0 %v2274_v53 }
 0x296   :  { %2706 = vmatmul.mubr.bf16.vlgmr.msra.gmra.mrb[20].mxu0 %v2273_v55 }
 0x297   :  { %2715 = vmatpush1.bf16.msra.mxu0 %v3800_v23  ;;  %3315 = vmatpush3.bf16.msra.mxu1 %v3863_v32 }
 0x298   :  { %2716 = vmatprep.subr.bf16.mxu0 %v3805_v56 }
 0x29b   :  { %2717 = vmatpush1.bf16.msra.mxu0 %v3803_v58 }
 0x29c   :  { %2718 = vmatprep.subr.bf16.mxu0 %v3808_v20 }
 0x29f   :  { %2719 = vmatpush1.bf16.msra.mxu0 %v3806_v61 }
 0x2a0   :  { %2720 = vmatprep.subr.bf16.mxu0 %v3811_v39 }
 0x2a3   :  { %2721 = vmatpush1.bf16.msra.mxu0 %v3809_v63 }
 0x2a4   :  { %2722 = vmatprep.subr.bf16.mxu0 %v3814_v0 }
 0x2a7   :  { %2723 = vmatpush1.bf16.msra.mxu0 %v3812_v4 }
 0x2a8   :  { %2724 = vmatprep.subr.bf16.mxu0 %v3817_v5 }
 0x2ab   :  { %2725 = vmatpush1.bf16.msra.mxu0 %v3815_v6 }
 0x2ac   :  { %2726 = vmatprep.subr.bf16.mxu0 %v3820_v7 }
 0x2af   :  { %2727 = vmatpush1.bf16.msra.mxu0 %v3818_v9 }
 0x2b0   :  { %2728 = vmatprep.subr.bf16.mxu0 %v3823_v10 }
 0x2b3   :  { %2729 = vmatpush1.bf16.msra.mxu0 %v3821_v11 }
 0x2b4   :  { %2730 = vmatprep.subr.bf16.mxu0 %v3826_v12 }
 0x2b7   :  { %2731 = vmatpush1.bf16.msra.mxu0 %v3824_v13 }
 0x2b8   :  { %2732 = vmatprep.subr.bf16.mxu0 %v3829_v14 }
 0x2bb   :  { %2733 = vmatpush1.bf16.msra.mxu0 %v3827_v15 }
 0x2bc   :  { %2734 = vmatprep.subr.bf16.mxu0 %v3832_v16 }
 0x2bf   :  { %2735 = vmatpush1.bf16.msra.mxu0 %v3830_v17 }
 0x2c0   :  { %2736 = vmatprep.subr.bf16.mxu0 %v3835_v18 }
 0x2c3   :  { %2737 = vmatpush1.bf16.msra.mxu0 %v3833_v19 }
 0x2c4   :  { %2738 = vmatprep.subr.bf16.mxu0 %v3838_v21 }
 0x2c7   :  { %2739 = vmatpush1.bf16.msra.mxu0 %v3836_v22 }
 0x2c8   :  { %2740 = vmatprep.subr.bf16.mxu0 %v3841_v25 }
 0x2cb   :  { %2741 = vmatpush1.bf16.msra.mxu0 %v3839_v26 }
 0x2cc   :  { %2742 = vmatprep.subr.bf16.mxu0 %v3844_v27 }
 0x2cf   :  { %2743 = vmatpush1.bf16.msra.mxu0 %v3842_v28 }
 0x2d0   :  { %2744 = vmatprep.subr.bf16.mxu0 %v3847_v29 }
 0x2d3   :  { %2745 = vmatpush1.bf16.msra.mxu0 %v3845_v30 }
 0x305   :  { %v2262_v37 = vpop.f32.mrb[4].mxu1 }
 0x306   :  { %v3326_v38 = vadd.f32 %v2262_v37, %v652_v31  ;;  %v2264_v40 = vpop.f32.mrb[5].mxu1 }
 0x307   :  { %v3327_v24 = vadd.f32 %v2264_v40, %v656_v8  ;;  %v2266_v52 = vpop.f32.mrb[6].mxu1 }
 0x308   :  { %v2271_v42 = vmax.f32 %v3326_v38, 0.0  ;;  %v2267_v2 = vpop.f32.mrb[7].mxu1 }
 0x309   :  { %v2272_v45 = vmax.f32 %v3327_v24, 0.0 }
 0x30a   :  { %v2275_v54 = vpack.c.bf16 %v2271_v42, %v2271_v42 }
 0x30b   :  { %v2276_v46 = vpack.c.bf16 %v2272_v45, %v2272_v45 }
 0x30d   :  { %2746 = vmatprep.mubr.bf16.mxu0 %v2276_v46 }
 0x30e   :  { %2747 = vmatmul.mubr.bf16.vlgmr.msra.gmra.mrb[20].mxu0 %v2275_v54 }
 0x3e1   :  { %v2748_v50 = vpop.f32.mrb[20].mxu0 }
 0x3e2   :  { %v3328_v34 = vadd.f32 %v2748_v50, %v2346_v36  ;;  %v2750_v51 = vpop.f32.mrb[21].mxu0 }
 0x3e3   :  { %v3329_v53 = vadd.f32 %v2750_v51, %v2350_v49  ;;  %v2752_v23 = vpop.f32.mrb[22].mxu0 }
 0x3e4   :  { %v2755_v55 = vmax.f32 %v3328_v34, 0.0  ;;  %v2753_v56 = vpop.f32.mrb[23].mxu0 }
 0x3e5   :  { %v2756_v57 = vmax.f32 %v3329_v53, 0.0 }
 0x3e6   :  { %v2757_v58 = vpack.c.bf16 %v2755_v55, %v2755_v55 }
 0x3e7   :  { %v2758_v1 = vpack.c.bf16 %v2756_v57, %v2756_v57 }
 0x3e9   :  { %2926 = vmatprep.mubr.bf16.mxu1 %v2758_v1 }
 0x3ea   :  { %2927 = vmatmul.mubr.bf16.vlgmr.msra.gmra.mrb[8].mxu1 %v2757_v58 }
 0x4bd   :  { %v3316_v20 = vpop.f32.mrb[8].mxu1 }
 0x4be   :  { %v3317_v59 = vpop.f32.mrb[9].mxu1 }
 0x4bf   :  { %v3318_v60 = vadd.f32 %v3317_v59, %v3316_v20  ;;  %v3319_v35 = vpop.f32.mrb[10].mxu1 }
 0x4c0   :  { %v3320_v61 = vpop.f32.mrb[11].mxu1 }
 0x4c1   :  { %v2929_v39 = vadd.f32 %v3318_v60, %v3283_v33 }
 0x4c3   :  { %2934 = vmax.xlane.f32.xlu0 %v2929_v39 }
 0x550   :  { %v2935_v62 = vpop.xlane.xlu0 %2934 }
 0x551   :  { %v2936_v43 = vsub.f32 %v2929_v39, %v2935_v62 }
 0x553   :  { %v2937_v63 = vmul.f32 1.442695, %v2936_v43 }
 0x555   :  { %3864 = vpow2.f32 %v2937_v63 }
 0x55f   :  { %v3865_v0 = vpop.eup %3864 }
 0x560   :  { %2939 = vadd.xlane.f32.xlu0 %v3865_v0 }
 0x5ed   :  { %v2940_v3 = vpop.xlane.xlu0 %2939 }
 0x5ee   :  { %3866 = vrcp.f32 %v2940_v3 }
 0x5f8   :  { %v3867_v4 = vpop.eup %3866 }
 0x5f9   :  { %v2942_v5 = vmul.f32 %v3867_v4, %v3865_v0 }
 0x5fb   :  { %2943 = vst [vmem:[%s4190_s9] sm:$0xff] %v2942_v5 }
 0x5fc   :  { %2948 = vsyncpa [#allocation3], 1 }
 0x5fd   :  { %2949 = vsyncpa [#allocation5], 1 }
 0x5fe   :  { %2950 = vsyncpa [#allocation8], 1 }

</bundles_post_ra>
